<compile_context>
chip_gen: v7x
topology: tpu7x:2x2x1
jax: 0.10.0
libtpu: 0.0.40
codegen_flags: <defaults>
</compile_context>

<pallas_src>
import jax
import jax.numpy as jnp
from jax.experimental import pallas as pl
from jax.experimental.pallas import tpu as pltpu

raw_text = ('We are about to study the idea of a computational process.\n'
            'Computational processes are abstract beings that inhabit computers.\n'
            'As they evolve, processes manipulate other abstract things called data.\n'
            'The evolution of a process is directed by a pattern of rules\n'
            'called a program. People create programs to direct processes. In effect,\n'
            'we conjure the spirits of the computer with our spells.').split()

vocab = sorted(set(raw_text))            # sorted for determinism
VOCAB_SIZE = len(vocab)                  # 49
EMBEDDING_DIM = 16
CONTEXT_SIZE = 2
N_CTX = CONTEXT_SIZE * 2                 # 4
D_IN = N_CTX * EMBEDDING_DIM             # 64
HIDDEN = 128

NEG_BIG = -1e30                          # mask value for padded vocab lanes


def _round_up(x, m):
    return (x + m - 1) // m * m


VOCAB_PAD = _round_up(VOCAB_SIZE, 128)   # 128 -> lane-dense vocab axis
K_FUSED = N_CTX * VOCAB_PAD              # 512 -> K dim of the fused gather+linear1


def cbow_kernel(idx_ref, w1f_ref, b1_ref, w2_ref, b2_ref, o_ref):
    """Fused embedding gather + linear1 + ReLU + linear2 + log_softmax.

    idx_ref: (TB, N_CTX)            int32  context-word indices
    w1f_ref: (N_CTX*VOCAB_PAD, 128) bf16   pre-fused emb @ w1 (per context block)
    b1_ref : (1, HIDDEN)            f32
    w2_ref : (HIDDEN, VOCAB_PAD)    bf16   (padded cols = 0)
    b2_ref : (1, VOCAB_PAD)         f32    (padded cols = -1e30)
    o_ref  : (TB, VOCAB_PAD)        f32    log-probs (padded lanes ~ -1e30)
    """
    tb = idx_ref.shape[0]
    n_ctx = idx_ref.shape[1]
    vocab_pad = w2_ref.shape[1]
    k_fused = w1f_ref.shape[0]

    idx = idx_ref[...]                                                   # (TB, N_CTX)
    lane = jax.lax.broadcasted_iota(jnp.int32, (tb, k_fused), 1)         # hoisted iota

    # Concatenated one-hot slab over all contexts: block c has its hot lane at
    # c*VOCAB_PAD + idx[:, c]. Built as 4 lane-wide compares + adds (VPU only,
    # no concat/reshape relayouts); 0/1 values are exact in bf16.
    oh = jnp.zeros((tb, k_fused), jnp.bfloat16)
    for c in range(n_ctx):
        oh = oh + (lane == (idx[:, c:c + 1] + c * vocab_pad)).astype(jnp.bfloat16)

    # Single MXU pass = embedding gather + linear1 (K accumulation inside MXU).
    h = jnp.dot(oh, w1f_ref[...], preferred_element_type=jnp.float32) + b1_ref[...]
    h = jnp.maximum(h, 0.0)                                              # ReLU (VPU)

    logits = jnp.dot(h.astype(jnp.bfloat16), w2_ref[...],
                     preferred_element_type=jnp.float32) + b2_ref[...]

    # log_softmax over vocab; padded lanes carry -1e30 bias so exp() -> 0.
    m = jnp.max(logits, axis=-1, keepdims=True)
    shifted = logits - m
    lse = jnp.log(jnp.sum(jnp.exp(shifted), axis=-1, keepdims=True))
    o_ref[...] = shifted - lse


def prepare_params(embeddings, w1, b1, w2, b2):
    """One-time parameter prep: pad, fuse emb@w1, cast MXU inputs to bf16.

    Run once outside the hot path; pass the result to cbow_forward.
    """
    emb_p = jnp.pad(embeddings, ((0, VOCAB_PAD - VOCAB_SIZE), (0, 0)))
    # W1f[c*VOCAB_PAD + v, :] = emb_p[v, :] @ w1[c*E:(c+1)*E, :]
    w1_ctx = w1.reshape(N_CTX, EMBEDDING_DIM, HIDDEN)
    w1f = jnp.einsum('ve,ceh->cvh', emb_p, w1_ctx,
                     preferred_element_type=jnp.float32)
    w1f = w1f.reshape(K_FUSED, HIDDEN)

    w2_p = jnp.pad(w2, ((0, 0), (0, VOCAB_PAD - VOCAB_SIZE)))
    b2_p = jnp.pad(b2, ((0, 0), (0, VOCAB_PAD - VOCAB_SIZE)),
                   constant_values=NEG_BIG)

    return (w1f.astype(jnp.bfloat16),
            b1.astype(jnp.float32),
            w2_p.astype(jnp.bfloat16),
            b2_p.astype(jnp.float32))


def cbow_forward(inputs, w1f, b1, w2_p, b2_p):
    """inputs: (N_CTX,) or (B, N_CTX) int indices -> (B, VOCAB_SIZE) log-probs.

    A 1-D input reproduces the original module exactly: output shape (1, VOCAB_SIZE).
    Weights must come from prepare_params (pre-padded / pre-fused / bf16).
    """
    if inputs.ndim == 1:
        inputs = inputs.reshape(1, -1)
    b = inputs.shape[0]

    # Batch tile: >= 8 f32 sublanes, <= 256 MXU rows (full-height on v6e/v7x).
    tb = min(256, _round_up(b, 8))
    b_pad = _round_up(b, tb)
    # Keep >= 2 grid tiles when possible so v7x's 2nd TensorCore gets work.
    if b_pad // tb < 2 and tb > 8:
        tb = max(8, _round_up(b_pad // 2, 8))
        b_pad = _round_up(b, tb)

    idx = jnp.pad(inputs.astype(jnp.int32), ((0, b_pad - b), (0, 0)))

    out = pl.pallas_call(
        cbow_kernel,
        out_shape=jax.ShapeDtypeStruct((b_pad, VOCAB_PAD), jnp.float32),
        grid=(b_pad // tb,),
        in_specs=[
            pl.BlockSpec((tb, N_CTX), lambda i: (i, 0)),                 # idx (streamed)
            pl.BlockSpec((K_FUSED, HIDDEN), lambda i: (0, 0)),           # resident
            pl.BlockSpec((1, HIDDEN), lambda i: (0, 0)),                 # resident
            pl.BlockSpec((HIDDEN, VOCAB_PAD), lambda i: (0, 0)),         # resident
            pl.BlockSpec((1, VOCAB_PAD), lambda i: (0, 0)),              # resident
        ],
        out_specs=pl.BlockSpec((tb, VOCAB_PAD), lambda i: (i, 0)),
        compiler_params=pltpu.CompilerParams(
            dimension_semantics=("parallel",)),   # shard batch tiles across TCs (v7x)
    )(idx, w1f, b1, w2_p, b2_p)

    return out[:b, :VOCAB_SIZE]


def cbow_reference(inputs, embeddings, w1, b1, w2, b2):
    """Pure-JAX f32 reference identical to the PyTorch forward."""
    if inputs.ndim == 1:
        inputs = inputs.reshape(1, -1)
    x = jnp.take(embeddings, inputs, axis=0).reshape(inputs.shape[0], -1)
    h = jnp.maximum(x @ w1 + b1, 0.0)
    logits = h @ w2 + b2
    return jax.nn.log_softmax(logits, axis=-1)


def init_params(key):
    k_emb, k_w1, k_b1, k_w2, k_b2 = jax.random.split(key, 5)
    # nn.Embedding default init: N(0, 1)
    embeddings = jax.random.normal(k_emb, (VOCAB_SIZE, EMBEDDING_DIM), jnp.float32)
    # nn.Linear default init: U(-1/sqrt(fan_in), 1/sqrt(fan_in))
    lim1 = 1.0 / jnp.sqrt(D_IN)
    w1 = jax.random.uniform(k_w1, (D_IN, HIDDEN), jnp.float32, -lim1, lim1)
    b1 = jax.random.uniform(k_b1, (1, HIDDEN), jnp.float32, -lim1, lim1)
    lim2 = 1.0 / jnp.sqrt(HIDDEN)
    w2 = jax.random.uniform(k_w2, (HIDDEN, VOCAB_SIZE), jnp.float32, -lim2, lim2)
    b2 = jax.random.uniform(k_b2, (1, VOCAB_SIZE), jnp.float32, -lim2, lim2)
    return embeddings, w1, b1, w2, b2


if __name__ == "__main__":
    key = jax.random.PRNGKey(0)
    k_params, k_idx = jax.random.split(key)
    raw_params = init_params(k_params)
    prepped = jax.tree_util.tree_map(jax.block_until_ready,
                                     prepare_params(*raw_params))  # one-time prep

    # A batch of context windows (each row = one forward pass of the module).
    B = 256
    inputs = jax.random.randint(k_idx, (B, N_CTX), 0, VOCAB_SIZE, jnp.int32)

    fwd = jax.jit(cbow_forward)
    log_probs = jax.block_until_ready(fwd(inputs, *prepped))
    assert log_probs.shape == (B, VOCAB_SIZE), log_probs.shape

    # Correctness vs pure-JAX f32 reference. Tolerance relaxed to 3e-2 because
    # the kernel's MXU inputs (fused weight, w2, activations) are bf16 with f32
    # accumulation (per perf review); typical error is ~3e-3.
    ref = cbow_reference(inputs, *raw_params)
    max_err = float(jnp.max(jnp.abs(log_probs - ref)))
    assert jnp.allclose(log_probs, ref, rtol=3e-2, atol=3e-2), max_err

    # log_softmax rows sum to 1 in probability space.
    row_prob = jnp.sum(jnp.exp(log_probs), axis=-1)
    assert jnp.allclose(row_prob, 1.0, atol=1e-3), row_prob

    # Single-window call keeps the original module's (1, vocab) semantics.
    single = jax.block_until_ready(cbow_forward(inputs[0], *prepped))
    assert single.shape == (1, VOCAB_SIZE)
    assert jnp.allclose(single, ref[:1], rtol=3e-2, atol=3e-2)

    print("KERNEL_OK")
</pallas_src>

<mosaic_0001>
module attributes {stable_mosaic.version = 11 : i64} {
  func.func @cbow_kernel(%arg0: i32, %arg1: memref<128x4xi32, #tpu.memory_space<vmem>>, %arg2: memref<512x128xbf16, #tpu.memory_space<vmem>>, %arg3: memref<1x128xf32, #tpu.memory_space<vmem>>, %arg4: memref<128x128xbf16, #tpu.memory_space<vmem>>, %arg5: memref<1x128xf32, #tpu.memory_space<vmem>>, %arg6: memref<128x128xf32, #tpu.memory_space<vmem>>) attributes {dimension_semantics = [#tpu.dimension_semantics<parallel>], iteration_bounds = array<i64: 2>, scalar_prefetch = 0 : i64, scratch_operands = 0 : i64, tpu.core_type = #tpu.core_type<tc>, window_params = [{transform_indices = @transform_0, window_bounds = array<i64: 128, 4>}, {pipeline_mode = #tpu.pipeline_mode<synchronous>, transform_indices = @transform_1, window_bounds = array<i64: 512, 128>}, {pipeline_mode = #tpu.pipeline_mode<synchronous>, transform_indices = @transform_2, window_bounds = array<i64: 1, 128>}, {pipeline_mode = #tpu.pipeline_mode<synchronous>, transform_indices = @transform_3, window_bounds = array<i64: 128, 128>}, {pipeline_mode = #tpu.pipeline_mode<synchronous>, transform_indices = @transform_4, window_bounds = array<i64: 1, 128>}, {transform_indices = @transform_5, window_bounds = array<i64: 128, 128>}]} {
    %c0 = arith.constant 0 : index
    %c0_0 = arith.constant 0 : index
    %0 = vector.load %arg1[%c0, %c0_0] : memref<128x4xi32, #tpu.memory_space<vmem>>, vector<128x4xi32>
    %1 = tpu.iota {dimensions = array<i32: 1>} : vector<128x512xi32>
    %cst = arith.constant 0.000000e+00 : bf16
    %2 = vector.broadcast %cst : bf16 to vector<128x512xbf16>
    %3 = vector.extract_strided_slice %0 {offsets = [0, 0], sizes = [128, 1], strides = [1, 1]} : vector<128x4xi32> to vector<128x1xi32>
    %c0_i32 = arith.constant 0 : i32
    %4 = vector.broadcast %c0_i32 : i32 to vector<128x1xi32>
    %5 = arith.addi %3, %4 : vector<128x1xi32>
    %6 = vector.broadcast %5 : vector<128x1xi32> to vector<128x512xi32>
    %7 = arith.cmpi eq, %1, %6 : vector<128x512xi32>
    %8 = arith.extui %7 : vector<128x512xi1> to vector<128x512xi32>
    %9 = arith.sitofp %8 : vector<128x512xi32> to vector<128x512xf32>
    %10 = arith.truncf %9 : vector<128x512xf32> to vector<128x512xbf16>
    %11 = arith.addf %2, %10 : vector<128x512xbf16>
    %12 = vector.extract_strided_slice %0 {offsets = [0, 1], sizes = [128, 1], strides = [1, 1]} : vector<128x4xi32> to vector<128x1xi32>
    %c128_i32 = arith.constant 128 : i32
    %13 = vector.broadcast %c128_i32 : i32 to vector<128x1xi32>
    %14 = arith.addi %12, %13 : vector<128x1xi32>
    %15 = vector.broadcast %14 : vector<128x1xi32> to vector<128x512xi32>
    %16 = arith.cmpi eq, %1, %15 : vector<128x512xi32>
    %17 = arith.extui %16 : vector<128x512xi1> to vector<128x512xi32>
    %18 = arith.sitofp %17 : vector<128x512xi32> to vector<128x512xf32>
    %19 = arith.truncf %18 : vector<128x512xf32> to vector<128x512xbf16>
    %20 = arith.addf %11, %19 : vector<128x512xbf16>
    %21 = vector.extract_strided_slice %0 {offsets = [0, 2], sizes = [128, 1], strides = [1, 1]} : vector<128x4xi32> to vector<128x1xi32>
    %c256_i32 = arith.constant 256 : i32
    %22 = vector.broadcast %c256_i32 : i32 to vector<128x1xi32>
    %23 = arith.addi %21, %22 : vector<128x1xi32>
    %24 = vector.broadcast %23 : vector<128x1xi32> to vector<128x512xi32>
    %25 = arith.cmpi eq, %1, %24 : vector<128x512xi32>
    %26 = arith.extui %25 : vector<128x512xi1> to vector<128x512xi32>
    %27 = arith.sitofp %26 : vector<128x512xi32> to vector<128x512xf32>
    %28 = arith.truncf %27 : vector<128x512xf32> to vector<128x512xbf16>
    %29 = arith.addf %20, %28 : vector<128x512xbf16>
    %30 = vector.extract_strided_slice %0 {offsets = [0, 3], sizes = [128, 1], strides = [1, 1]} : vector<128x4xi32> to vector<128x1xi32>
    %c384_i32 = arith.constant 384 : i32
    %31 = vector.broadcast %c384_i32 : i32 to vector<128x1xi32>
    %32 = arith.addi %30, %31 : vector<128x1xi32>
    %33 = vector.broadcast %32 : vector<128x1xi32> to vector<128x512xi32>
    %34 = arith.cmpi eq, %1, %33 : vector<128x512xi32>
    %35 = arith.extui %34 : vector<128x512xi1> to vector<128x512xi32>
    %36 = arith.sitofp %35 : vector<128x512xi32> to vector<128x512xf32>
    %37 = arith.truncf %36 : vector<128x512xf32> to vector<128x512xbf16>
    %38 = arith.addf %29, %37 : vector<128x512xbf16>
    %c0_1 = arith.constant 0 : index
    %c0_2 = arith.constant 0 : index
    %39 = vector.load %arg2[%c0_1, %c0_2] : memref<512x128xbf16, #tpu.memory_space<vmem>>, vector<512x128xbf16>
    %cst_3 = arith.constant dense<0.000000e+00> : vector<128x128xf32>
    %40 = tpu.matmul %38, %39, %cst_3 {dimension_numbers = #tpu.dot_dimension_numbers<[1], [0], [0], [1], [0, 0, 1, 1], [], []>} : vector<128x512xbf16>, vector<512x128xbf16>, vector<128x128xf32> -> vector<128x128xf32>
    %c0_4 = arith.constant 0 : index
    %c0_5 = arith.constant 0 : index
    %41 = vector.load %arg3[%c0_4, %c0_5] : memref<1x128xf32, #tpu.memory_space<vmem>>, vector<1x128xf32>
    %42 = vector.broadcast %41 : vector<1x128xf32> to vector<128x128xf32>
    %43 = arith.addf %40, %42 : vector<128x128xf32>
    %cst_6 = arith.constant 0.000000e+00 : f32
    %44 = vector.broadcast %cst_6 : f32 to vector<128x128xf32>
    %45 = arith.maximumf %43, %44 : vector<128x128xf32>
    %46 = arith.truncf %45 : vector<128x128xf32> to vector<128x128xbf16>
    %c0_7 = arith.constant 0 : index
    %c0_8 = arith.constant 0 : index
    %47 = vector.load %arg4[%c0_7, %c0_8] : memref<128x128xbf16, #tpu.memory_space<vmem>>, vector<128x128xbf16>
    %cst_9 = arith.constant dense<0.000000e+00> : vector<128x128xf32>
    %48 = tpu.matmul %46, %47, %cst_9 {dimension_numbers = #tpu.dot_dimension_numbers<[1], [0], [0], [1], [0, 0, 1, 1], [], []>} : vector<128x128xbf16>, vector<128x128xbf16>, vector<128x128xf32> -> vector<128x128xf32>
    %c0_10 = arith.constant 0 : index
    %c0_11 = arith.constant 0 : index
    %49 = vector.load %arg5[%c0_10, %c0_11] : memref<1x128xf32, #tpu.memory_space<vmem>>, vector<1x128xf32>
    %50 = vector.broadcast %49 : vector<1x128xf32> to vector<128x128xf32>
    %51 = arith.addf %48, %50 : vector<128x128xf32>
    %cst_12 = arith.constant dense<0xFF800000> : vector<128xf32>
    %52 = vector.multi_reduction <maximumf>, %51, %cst_12 [1] : vector<128x128xf32> to vector<128xf32>
    %53 = vector.shape_cast %52 : vector<128xf32> to vector<128x1xf32>
    %54 = vector.broadcast %53 : vector<128x1xf32> to vector<128x128xf32>
    %55 = arith.subf %51, %54 : vector<128x128xf32>
    %56 = math.exp %55 : vector<128x128xf32>
    %cst_13 = arith.constant dense<0.000000e+00> : vector<128xf32>
    %57 = vector.multi_reduction <add>, %56, %cst_13 [1] : vector<128x128xf32> to vector<128xf32>
    %58 = vector.shape_cast %57 : vector<128xf32> to vector<128x1xf32>
    %59 = math.log %58 : vector<128x1xf32>
    %60 = vector.broadcast %59 : vector<128x1xf32> to vector<128x128xf32>
    %61 = arith.subf %55, %60 : vector<128x128xf32>
    %c0_14 = arith.constant 0 : index
    %c0_15 = arith.constant 0 : index
    %62 = vector.load %arg6[%c0_14, %c0_15] : memref<128x128xf32, #tpu.memory_space<vmem>>, vector<128x128xf32>
    tpu.vector_store %arg6[%c0_14, %c0_15], %61 {strides = array<i32>} : memref<128x128xf32, #tpu.memory_space<vmem>>, vector<128x128xf32>,
    return
  }
  func.func @transform_0(%arg0: i32) -> (i32, i32) {
    %c0_i32 = arith.constant 0 : i32
    %c0_i32_0 = arith.constant 0 : i32
    return %arg0, %c0_i32 : i32, i32
  }
  func.func @transform_1(%arg0: i32) -> (i32, i32) {
    %c0_i32 = arith.constant 0 : i32
    %c0_i32_0 = arith.constant 0 : i32
    %c0_i32_1 = arith.constant 0 : i32
    return %c0_i32, %c0_i32_0 : i32, i32
  }
  func.func @transform_2(%arg0: i32) -> (i32, i32) {
    %c0_i32 = arith.constant 0 : i32
    %c0_i32_0 = arith.constant 0 : i32
    %c0_i32_1 = arith.constant 0 : i32
    return %c0_i32, %c0_i32_0 : i32, i32
  }
  func.func @transform_3(%arg0: i32) -> (i32, i32) {
    %c0_i32 = arith.constant 0 : i32
    %c0_i32_0 = arith.constant 0 : i32
    %c0_i32_1 = arith.constant 0 : i32
    return %c0_i32, %c0_i32_0 : i32, i32
  }
  func.func @transform_4(%arg0: i32) -> (i32, i32) {
    %c0_i32 = arith.constant 0 : i32
    %c0_i32_0 = arith.constant 0 : i32
    %c0_i32_1 = arith.constant 0 : i32
    return %c0_i32, %c0_i32_0 : i32, i32
  }
  func.func @transform_5(%arg0: i32) -> (i32, i32) {
    %c0_i32 = arith.constant 0 : i32
    %c0_i32_0 = arith.constant 0 : i32
    return %arg0, %c0_i32 : i32, i32
  }
}

</mosaic_0001>

<bundles_post_ra>
// kernel: cbow_forward.1
= control target key start
LH: loop header
LB: loop body
LE: loop exit
PB: predicated region body
PF: predicated region fallthrough
CT: control target
= control target key end

     0   :  { %10 = vsyncpa [#allocation3], 0  ;;  %s3173_s18 = smov 0   ;;  %s4871_s0 = inlined_call_operand.vmem [shape: s32[256,4], index: 0, kind: input, shape index: {}]   ;;  %s4872_s1 = inlined_call_operand.vmem [shape: bf16[512,128], index: 1, kind: input, shape index: {}]   ;;  %s4873_s2 = inlined_call_operand.vmem [shape: f32[1,128], index: 2, kind: input, shape index: {}]   ;;  %s4874_s3 = inlined_call_operand.hbm [shape: bf16[128,128], index: 3, kind: input, shape index: {}]   ;;  %s4875_s4 = inlined_call_operand.vmem [shape: f32[1,128], index: 4, kind: input, shape index: {}]   ;;  %s4876_s5 = inlined_call_operand.vmem [shape: f32[256,128], index: 5, kind: output, shape index: {}]  }
   0x1 LB: > { %s2422_s19 = sadd.s32 4294967295, %s3133_s18   ;;  %p2424_p0 = scmp.ge.s32.totalorder %s3133_s18, 1  ;;  %s3133_s18 = sphi %s3173_s18, %s16_s18  }
   0x2   : > { %p157_p1 = scmp.lt.s32.totalorder %s3133_s18, 3  ;;  %s3135_s20 = smov [#allocation2]  }
   0x3   : > { %s175_s21 = sshll.u32 %s3135_s20, 4  ;;  %p3187_p3 = scmp.eq.s32.totalorder %s2422_s19, 0  ;;  %s176_s21 = int_to_ptr.vmem [resolvable:$true] %s175_s21 }
   0x4   : > { %p3181_p2 = pnand %p2424_p0, %p157_p1  ;;  %s3095_s27 = scalar_lea.hbm %s4874_s3, 1024 }
   0x5   : > { %s4900_s23 = scalar_select %p3187_p3, 1, 0 }
   0x6   : > { %s4899_s22 = scalar_select %p3181_p2, 1, 0 }
   0x7   : > { %p2929_p4 = pneg %p3181_p2  ;;  %p3096_p6 = scmp.ne.s32.totalorder %s4874_s3, %s3095_s27 }
   0x8   : > { %p3102_p10 = scmp.lt.u32.totalorder %s3095_s27, %s4874_s3 }
   0x9   : > { %p3195_p5 = pnand %p3187_p3, %p2929_p4 }
   0xb   : > { %p3097_p7 = pneg %p3195_p5 }
   0xd   : > { %p3098_p8 = pnand %p3097_p7, %p3096_p6 }
   0xf   : > { %p3099_p9 = pneg %p3098_p8 }
  0x11   : > { %p3104_p11 = pnand %p3102_p10, %p3099_p9 }
  0x13   : > { %3107 = shalt.err (!%p3104_p11)
}
  0x14   : > { %s3108_s7 = scalar_lea.vmem %s176_s21, 1024  ;;  %p3116_p1 = scmp.lt.s32.totalorder %s176_s21, %s176_s21 }
  0x15   : > { %p3109_p12 = scmp.ne.s32.totalorder %s176_s21, %s3108_s7  ;;  %p3117_p4 = scmp.lt.s32.totalorder %s3108_s7, %s3108_s7 }
  0x17   : > { %p3111_p13 = pnand %p3109_p12, %p3097_p7  ;;  %p3118_p3 = por %p3117_p4, %p3116_p1 }
  0x19   : > { %p3112_p0 = pneg %p3111_p13 }
  0x1b   : > { %p3119_p2 = pnand %p3118_p3, %p3112_p0 }
  0x1d   : > { %3122 = shalt.err (!%p3119_p2)
}
  0x1e   : > { %s3136_s8 = smov 64   ;;  %s3137_s9 = smov 4  }
  0x1f   : > { %2932 = dma.hbm_to_vmem [thread:$0]  (!%p3195_p5), %s4874_s3, 1024, %s176_s21, [#allocation3], %s3136_s8, %s3136_s8, %s3137_s9  }
  0x20   : > { %p4902_p6 = scmp.ne.s32.totalorder %s4899_s22, 0 }
  0x22   : > { %203 = sbr.rel (%p4902_p6) target bundleno = 1145 (0x479), region = 40 }
  0x29   : > { %p4903_p8 = scmp.ne.s32.totalorder %s4900_s23, 0 }
  0x2b   : > { %3128 = dma.done.wait (%p4903_p8), [#allocation3], 1024  }
  0x2c   : > { %3130 = vsyncadd (%p4903_p8), [#allocation3], 4294966272  ;;  %s2429_s12 = sshll.u32 %s2422_s19, 4  ;;  %v4884_v0 = vmov 2   ;;  %v4880_v1 = vmov 1   ;;  %v4882_v18 = vmov 3  }
  0x2d   : > { %2952 = vset.pattern.permute.xlu0 %v4884_v0  ;;  %2951 = vset.pattern.permute.xlu1 %v4880_v1  ;;  %p232_p2 = scmp.lt.s32.totalorder %s2429_s12, 31  ;;  %v4881_v21 = vmov 0   ;;  %v2991_v24 = vld [vmem:[%s4872_s1 + $0x40] sm:$0xff]   ;;  %v2995_v30 = vld [vmem:[%s4872_s1 + $0x48] sm:$0xff]   ;;  %v2999_v36 = vld [vmem:[%s4872_s1 + $0x50] sm:$0xff]  }
  0x2e   : > { %v2992_v25 = vld [vmem:[%s4872_s1 + $0xc0] sm:$0xff]   ;;  %2733 = vmatprep.subr.bf16.mxu0 %v2991_v24  ;;  %v2996_v31 = vld [vmem:[%s4872_s1 + $0xc8] sm:$0xff]   ;;  %v3000_v37 = vld [vmem:[%s4872_s1 + $0xd0] sm:$0xff]  }
  0x2f   : > { %s4999_s12 = smov (!%p232_p2, %s2429_s12), 31  ;;  %v2993_v28 = vld [vmem:[%s4872_s1] sm:$0xff]   ;;  %2797 = vmatprep.subr.bf16.mxu1 %v2992_v25  ;;  %v2997_v34 = vld [vmem:[%s4872_s1 + $0x8] sm:$0xff]   ;;  %v3001_v39 = vld [vmem:[%s4872_s1 + $0x10] sm:$0xff]  }
  0x30   : > { %s2430_s13 = sshll.u32 %s4999_s12, 3  ;;  %v2994_v29 = vld [vmem:[%s4872_s1 + $0x80] sm:$0xff]   ;;  %2734 = vmatpush3.bf16.msra.mxu0 %v2993_v28  ;;  %v2998_v35 = vld [vmem:[%s4872_s1 + $0x88] sm:$0xff]   ;;  %v3002_v40 = vld [vmem:[%s4872_s1 + $0x90] sm:$0xff]  }
  0x31   : > { %s3233_s16 = scalar_lea.vmem %s4871_s0, %s2430_s13  ;;  %2798 = vmatpush3.bf16.msra.mxu1 %v2994_v29  ;;  %2735 = vmatprep.subr.bf16.mxu0 %v2995_v30  ;;  %v3003_v41 = vld [vmem:[%s4872_s1 + $0x58] sm:$0xff]   ;;  %v3007_v46 = vld [vmem:[%s4872_s1 + $0x60] sm:$0xff]   ;;  %v3011_v50 = vld [vmem:[%s4872_s1 + $0x68] sm:$0xff]   ;;  %v260_v30 = vlaneseq  ;;  %s4834_s24 = scalar_lea.vmem %s4876_s5, %s2430_s13 }
  0x32   : > { %v3236_v2 = vld [vmem:[%s3233_s16] sm:$0xff]  ;;  %v3239_v3 = vld [vmem:[%s3233_s16 + $0x18] sm:$0xff]  ;;  %v3242_v4 = vld [vmem:[%s3233_s16 + $0x8] sm:$0xff]  ;;  %2799 = vmatprep.subr.bf16.mxu1 %v2996_v31 }
  0x33   : > { %v889_v5 = vadd.s32 256, %v3236_v2  ;;  %v569_v6 = vadd.s32 128, %v3236_v2  ;;  %v892_v7 = vadd.s32 256, %v3239_v3  ;;  %v570_v8 = vadd.s32 128, %v3242_v4  ;;  %v3249_v9 = vld [vmem:[%s3233_s16 + $0x20] sm:$0xff]  ;;  %v3252_v10 = vld [vmem:[%s3233_s16 + $0x38] sm:$0xff] }
  0x34   : > { %v1210_v11 = vadd.s32 384, %v3242_v4  ;;  %v890_v12 = vadd.s32 256, %v3242_v4  ;;  %v1213_v13 = vadd.s32 384, %v3249_v9  ;;  %v1209_v14 = vadd.s32 384, %v3236_v2  ;;  %v246_v16 = vld [vmem:[%s3233_s16 + $0x10] sm:$0xff]  ;;  %v3261_v17 = vld [vmem:[%s3233_s16 + $0x28] sm:$0xff]  ;;  %2736 = vmatpush3.bf16.msra.mxu0 %v2997_v34 }
  0x35   : > { %906 = vperm.xlu0 %2952, %v889_v5   ;;  %586 = vperm.xlu1 %2951, %v569_v6   ;;  %v1216_v15 = vadd.s32 384, %v3252_v10  ;;  %v571_v19 = vadd.s32 128, %v246_v16  ;;  %v574_v20 = vadd.s32 128, %v3261_v17  ;;  %v3269_v22 = vld [vmem:[%s3233_s16 + $0x40] sm:$0xff]  ;;  %v3274_v23 = vld [vmem:[%s3233_s16 + $0x58] sm:$0xff]  ;;  %v572_v26 = vadd.s32 128, %v3239_v3 }
  0x36   : > { %v577_v27 = vadd.s32 128, %v3269_v22  ;;  %v891_v32 = vadd.s32 256, %v246_v16  ;;  %v580_v33 = vadd.s32 128, %v3274_v23  ;;  %2800 = vmatpush3.bf16.msra.mxu1 %v2998_v35  ;;  %v1211_v38 = vadd.s32 384, %v246_v16  ;;  %2737 = vmatprep.subr.bf16.mxu0 %v2999_v36  ;;  %v3004_v42 = vld [vmem:[%s4872_s1 + $0xd8] sm:$0xff]   ;;  %v3008_v47 = vld [vmem:[%s4872_s1 + $0xe0] sm:$0xff]  }
  0x37   : > { %2801 = vmatprep.subr.bf16.mxu1 %v3000_v37  ;;  %v3005_v43 = vld [vmem:[%s4872_s1 + $0x18] sm:$0xff]   ;;  %v1212_v45 = vadd.s32 384, %v3239_v3  ;;  %v3009_v48 = vld [vmem:[%s4872_s1 + $0x20] sm:$0xff]   ;;  %v3012_v51 = vld [vmem:[%s4872_s1 + $0xe8] sm:$0xff]   ;;  %v573_v54 = vadd.s32 128, %v3249_v9  ;;  %v893_v60 = vadd.s32 256, %v3249_v9 }
  0x38   : > { %2738 = vmatpush3.bf16.msra.mxu0 %v3001_v39  ;;  %v3006_v44 = vld [vmem:[%s4872_s1 + $0x98] sm:$0xff]   ;;  %v3010_v49 = vld [vmem:[%s4872_s1 + $0xa0] sm:$0xff]   ;;  %v3013_v52 = vld [vmem:[%s4872_s1 + $0x28] sm:$0xff]   ;;  %v1217_v28 = vadd.s32 384, %v3269_v22 }
  0x39   : > { %915 = vperm.xlu0 %2952, %v892_v7   ;;  %589 = vperm.xlu1 %2951, %v570_v8   ;;  %v3014_v53 = vld [vmem:[%s4872_s1 + $0xa8] sm:$0xff]   ;;  %v3015_v55 = vld [vmem:[%s4872_s1 + $0x70] sm:$0xff]   ;;  %v3019_v61 = vld [vmem:[%s4872_s1 + $0x78] sm:$0xff]   ;;  %v1214_v7 = vadd.s32 384, %v3261_v17 }
  0x3a   : > { %2802 = vmatpush3.bf16.msra.mxu1 %v3002_v40  ;;  %2739 = vmatprep.subr.bf16.mxu0 %v3003_v41  ;;  %v3016_v56 = vld [vmem:[%s4872_s1 + $0xf0] sm:$0xff]   ;;  %v3020_v62 = vld [vmem:[%s4872_s1 + $0xf8] sm:$0xff]   ;;  %v253_v8 = vld [vmem:[%s3233_s16 + $0x48] sm:$0xff]  ;;  %v900_v40 = vadd.s32 256, %v3274_v23  ;;  %v1220_v41 = vadd.s32 384, %v3274_v23 }
  0x3b   : > { %2803 = vmatprep.subr.bf16.mxu1 %v3004_v42  ;;  %v3017_v57 = vld [vmem:[%s4872_s1 + $0x30] sm:$0xff]   ;;  %v3021_v63 = vld [vmem:[%s4872_s1 + $0x38] sm:$0xff]   ;;  %v1218_v29 = vadd.s32 384, %v253_v8 }
  0x3c   : > { %2740 = vmatpush3.bf16.msra.mxu0 %v3005_v43  ;;  %v3018_v58 = vld [vmem:[%s4872_s1 + $0xb0] sm:$0xff]   ;;  %v3422_v25 = vld [vmem:[%s3233_s16 + $0x78] sm:$0xff] }
  0x3d   : > { %2958 = vset.pattern.permute.xlu0 %v4882_v18  ;;  %2953 = vset.pattern.permute.xlu1 %v4884_v0  ;;  %v3377_v59 = vld [vmem:[%s3233_s16 + $0x50] sm:$0xff] }
  0x3e   : > { %1229 = vperm.xlu0 %2958, %v1210_v11   ;;  %909 = vperm.xlu1 %2953, %v890_v12   ;;  %v250_v5 = vld [vmem:[%s3233_s16 + $0x30] sm:$0xff]  ;;  %v3405_v11 = vld [vmem:[%s3233_s16 + $0x60] sm:$0xff]  ;;  %v579_v31 = vadd.s32 128, %v3377_v59  ;;  %v899_v35 = vadd.s32 256, %v3377_v59 }
  0x3f   : > { %2804 = vmatpush3.bf16.msra.mxu1 %v3006_v44  ;;  %2741 = vmatprep.subr.bf16.mxu0 %v3007_v46  ;;  %v895_v6 = vadd.s32 256, %v250_v5  ;;  %v901_v12 = vadd.s32 256, %v3405_v11  ;;  %v1215_v24 = vadd.s32 384, %v250_v5  ;;  %v3459_v42 = vadd.s32 128, %v3405_v11 }
  0x40   : > { %2805 = vmatprep.subr.bf16.mxu1 %v3008_v47  ;;  %2742 = vmatpush3.bf16.msra.mxu0 %v3009_v48  ;;  %v4890_v48 = vmov 0.0  }
  0x41   : > { %2743 = vmatprep.subr.bf16.mxu0 %v3011_v50 }
  0x42   : > { %1238 = vperm.xlu0 %2958, %v1213_v13   ;;  %2954 = vset.pattern.permute.xlu1 %v4882_v18  ;;  %v575_v13 = vadd.s32 128, %v250_v5 }
  0x43   : > { %1226 = vperm.xlu1 %2954, %v1209_v14   ;;  %2806 = vmatpush3.bf16.msra.mxu1 %v3010_v49  ;;  %v1219_v14 = vadd.s32 384, %v3377_v59 }
  0x44   : > { %2807 = vmatprep.subr.bf16.mxu1 %v3012_v51  ;;  %2744 = vmatpush3.bf16.msra.mxu0 %v3013_v52 }
  0x45   : > { %2745 = vmatprep.subr.bf16.mxu0 %v3015_v55 }
  0x46   : > { %1247 = vperm.xlu0 %2958, %v1216_v15   ;;  %v576_v15 = vadd.s32 128, %v3252_v10 }
  0x47   : > { %2955 = vset.pattern.permute.xlu1 %v4881_v21  ;;  %2808 = vmatpush3.bf16.msra.mxu1 %v3014_v53  ;;  %v3495_v53 = vadd.s32 384, %v3422_v25 }
  0x48   : > { %272 = vperm.xlu1 %2955, %v246_v16   ;;  %2809 = vmatprep.subr.bf16.mxu1 %v3016_v56 }
  0x49   : > { %2746 = vmatpush3.bf16.msra.mxu0 %v3017_v57  ;;  %4906 = vst [vmem:[#allocation7_spill] sm:$0xff] %v3495_v53 }
  0x4a   : > { %2968 = vset.pattern.permute.xlu0 %v4880_v1  ;;  %2747 = vmatprep.subr.bf16.mxu0 %v3019_v61 }
  0x4b   : > { %592 = vperm.xlu0 %2968, %v571_v19   ;;  %2810 = vmatpush3.bf16.msra.mxu1 %v3018_v58  ;;  %v3416_v19 = vld [vmem:[%s3233_s16 + $0x70] sm:$0xff] }
  0x4c   : > { %275 = vperm.xlu1 %2955, %v3239_v3   ;;  %v3395_v3 = vld [vmem:[%s3233_s16 + $0x68] sm:$0xff]  ;;  %2811 = vmatprep.subr.bf16.mxu1 %v3020_v62  ;;  %v3477_v46 = vadd.s32 256, %v3416_v19  ;;  %v3480_v47 = vadd.s32 384, %v3416_v19 }
  0x4d   : > { %2748 = vmatpush3.bf16.msra.mxu0 %v3021_v63  ;;  %v1222_v16 = vadd.s32 384, %v3395_v3  ;;  %v3462_v43 = vadd.s32 128, %v3395_v3  ;;  %v3466_v44 = vadd.s32 256, %v3395_v3 }
  0x4e   : > { %4905 = vst [vmem:[#allocation6_spill] sm:$0xff] %v3480_v47 }
  0x4f   : > { %601 = vperm.xlu0 %2968, %v574_v20   ;;  %v583_v20 = vadd.s32 128, %v3416_v19 }
  0x50   : > { %2956 = vset.pattern.permute.xlu1 %v4880_v1 }
  0x51   : > { %595 = vperm.xlu1 %2956, %v572_v26   ;;  %v904_v26 = vadd.s32 256, %v3422_v25 }
  0x53   : > { %610 = vperm.xlu0 %2968, %v577_v27   ;;  %v897_v27 = vadd.s32 256, %v3269_v22 }
  0x55   : > { %2957 = vset.pattern.permute.xlu1 %v4884_v0 }
  0x56   : > { %912 = vperm.xlu1 %2957, %v891_v32   ;;  %v3438_v32 = vand.u32 127, %v260_v30 }
  0x57   : > { %619 = vperm.xlu0 %2968, %v580_v33  }
  0x58   : > { %v3451_v39 = vadd.s32 384, %v3438_v32 }
  0x5a   : > { %2959 = vset.pattern.permute.xlu1 %v4882_v18 }
  0x5b   : > { %2975 = vset.pattern.permute.xlu0 %v4881_v21  ;;  %1232 = vperm.xlu1 %2959, %v1211_v38   ;;  %v3448_v38 = vadd.s32 128, %v3438_v32 }
  0x5c   : > { %266 = vperm.xlu0 %2975, %v3236_v2   ;;  %v3022_v2 = vld [vmem:[%s4872_s1 + $0xb8] sm:$0xff]  }
  0x5d   : > { %2812 = vmatpush3.bf16.msra.mxu1 %v3022_v2  ;;  %4904 = vst [vmem:[#allocation5_spill] sm:$0xff] %v3448_v38 }
  0x5f   : > { %1235 = vperm.xlu1 %2959, %v1212_v45   ;;  %v3469_v45 = vadd.s32 384, %v3405_v11 }
  0x60   : > { %269 = vperm.xlu0 %2975, %v3242_v4   ;;  %v894_v4 = vadd.s32 256, %v3261_v17 }
  0x63   : > { %2960 = vset.pattern.permute.xlu1 %v4881_v21 }
  0x64   : > { %278 = vperm.xlu0 %2975, %v3249_v9   ;;  %281 = vperm.xlu1 %2960, %v3261_v17   ;;  %v898_v9 = vadd.s32 256, %v253_v8  ;;  %v896_v17 = vadd.s32 256, %v3252_v10 }
  0x68   : > { %2961 = vset.pattern.permute.xlu1 %v4880_v1  ;;  %287 = vperm.xlu0 %2975, %v3252_v10   ;;  %v578_v10 = vadd.s32 128, %v253_v8 }
  0x69   : > { %598 = vperm.xlu1 %2961, %v573_v54  }
  0x6c   : > { %296 = vperm.xlu0 %2975, %v3377_v59  }
  0x6d   : > { %2962 = vset.pattern.permute.xlu1 %v4884_v0 }
  0x6e   : > { %918 = vperm.xlu1 %2962, %v893_v60  }
  0x70   : > { %305 = vperm.xlu0 %2975, %v3395_v3  }
  0x72   : > { %921 = vperm.xlu1 %2962, %v894_v4  }
  0x74   : > { %2979 = vset.pattern.permute.xlu0 %v4884_v0 }
  0x75   : > { %924 = vperm.xlu0 %2979, %v895_v6  }
  0x76   : > { %2963 = vset.pattern.permute.xlu1 %v4882_v18 }
  0x77   : > { %1241 = vperm.xlu1 %2963, %v1214_v7  }
  0x79   : > { %933 = vperm.xlu0 %2979, %v898_v9  }
  0x7b   : > { %2964 = vset.pattern.permute.xlu1 %v4881_v21 }
  0x7c   : > { %284 = vperm.xlu1 %2964, %v250_v5  }
  0x7d   : > { %942 = vperm.xlu0 %2979, %v901_v12  }
  0x80   : > { %2965 = vset.pattern.permute.xlu1 %v4880_v1 }
  0x81   : > { %604 = vperm.xlu1 %2965, %v575_v13   ;;  %2981 = vset.pattern.permute.xlu0 %v4882_v18 }
  0x82   : > { %1256 = vperm.xlu0 %2981, %v1219_v14  }
  0x85   : > { %607 = vperm.xlu1 %2965, %v576_v15  }
  0x86   : > { %1265 = vperm.xlu0 %2981, %v1222_v16  }
  0x89   : > { %2966 = vset.pattern.permute.xlu1 %v4884_v0 }
  0x8a   : > { %927 = vperm.xlu1 %2966, %v896_v17   ;;  %2985 = vset.pattern.permute.xlu0 %v4880_v1 }
  0x8b   : > { %628 = vperm.xlu0 %2985, %v583_v20  }
  0x8e   : > { %2967 = vset.pattern.permute.xlu1 %v4882_v18 }
  0x8f   : > { %1244 = vperm.xlu1 %2967, %v1215_v24   ;;  %2988 = vset.pattern.permute.xlu0 %v4884_v0 }
  0x90   : > { %951 = vperm.xlu0 %2988, %v904_v26  }
  0x93   : > { %2969 = vset.pattern.permute.xlu1 %v4881_v21 }
  0x94   : > { %290 = vperm.xlu1 %2969, %v3269_v22   ;;  %2990 = vset.pattern.permute.xlu0 %v4882_v18  ;;  %v3442_v22 = vadd.s32 256, %v3438_v32 }
  0x98   : > { %293 = vperm.xlu1 %2969, %v253_v8  }
  0x9c   : > { %2970 = vset.pattern.permute.xlu1 %v4880_v1 }
  0x9d   : > { %613 = vperm.xlu1 %2970, %v578_v10  }
  0xa1   : > { %2971 = vset.pattern.permute.xlu1 %v4884_v0 }
  0xa2   : > { %930 = vperm.xlu1 %2971, %v897_v27  }
  0xa6   : > { %2972 = vset.pattern.permute.xlu1 %v4882_v18 }
  0xa7   : > { %1250 = vperm.xlu1 %2972, %v1217_v28  }
  0xab   : > { %1253 = vperm.xlu1 %2972, %v1218_v29  }
  0xaf   : > { %2973 = vset.pattern.permute.xlu1 %v4881_v21 }
  0xb0   : > { %299 = vperm.xlu1 %2973, %v3274_v23   ;;  %v3472_v23 = vadd.s32 128, %v3422_v25 }
  0xb4   : > { %2974 = vset.pattern.permute.xlu1 %v4880_v1  ;;  %v587_v33 = vpop.permute.xlu1 %586  ;;  %v907_v34 = vpop.permute.xlu0 %906 }
  0xb5   : > { %616 = vperm.xlu1 %2974, %v579_v31   ;;  %vm633_vm0 = vcmp.eq.s32.totalorder %v3438_v32, %v587_v33  ;;  %vm635_vm1 = vcmp.eq.s32.totalorder %v3442_v22, %v587_v33  ;;  %vm953_vm2 = vcmp.eq.s32.totalorder %v3438_v32, %v907_v34  ;;  %vm954_vm3 = vcmp.eq.s32.totalorder %v3448_v38, %v907_v34 }
  0xb6   : > { %vm955_vm4 = vcmp.eq.s32.totalorder %v3442_v22, %v907_v34  ;;  %v3483_v49 = vsel %vm633_vm0, 1.0, %v4890_v48  ;;  %v3486_v50 = vsel %vm635_vm1, 1.0, %v4890_v48  ;;  %vm956_vm6 = vcmp.eq.s32.totalorder %v3451_v39, %v907_v34 }
  0xb7   : > { %v3501_v54 = vsel %vm953_vm2, 1.0, %v4890_v48  ;;  %vm634_vm8 = vcmp.eq.s32.totalorder %v3448_v38, %v587_v33  ;;  %v3507_v55 = vsel %vm955_vm4, 1.0, %v4890_v48  ;;  %v3514_v56 = vsel %vm954_vm3, 1.0, %v4890_v48 }
  0xb8   : > { %v3445_v36 = vpop.permute.xlu1 %589  ;;  %v916_v37 = vpop.permute.xlu0 %915  ;;  %vm636_vm13 = vcmp.eq.s32.totalorder %v3451_v39, %v587_v33  ;;  %v3528_v60 = vsel %vm634_vm8, 1.0, %v4890_v48  ;;  %v3533_v61 = vsel %vm956_vm6, 1.0, %v4890_v48 }
  0xb9   : > { %2976 = vset.pattern.permute.xlu1 %v4884_v0  ;;  %vm637_vm5 = vcmp.eq.s32.totalorder %v3438_v32, %v3445_v36  ;;  %vm639_vm7 = vcmp.eq.s32.totalorder %v3442_v22, %v3445_v36  ;;  %vm965_vm9 = vcmp.eq.s32.totalorder %v3438_v32, %v916_v37  ;;  %vm966_vm10 = vcmp.eq.s32.totalorder %v3448_v38, %v916_v37 }
  0xba   : > { %936 = vperm.xlu1 %2976, %v899_v35   ;;  %v3517_v57 = vsel %vm637_vm5, 1.0, %v4890_v48  ;;  %vm967_vm11 = vcmp.eq.s32.totalorder %v3442_v22, %v916_v37  ;;  %vm968_vm12 = vcmp.eq.s32.totalorder %v3451_v39, %v916_v37  ;;  %v3523_v58 = vsel %vm639_vm7, 1.0, %v4890_v48 }
  0xbb   : > { %vm638_vm14 = vcmp.eq.s32.totalorder %v3448_v38, %v3445_v36  ;;  %v3536_v62 = vsel %vm965_vm9, 1.0, %v4890_v48  ;;  %v3539_v63 = vsel %vm966_vm10, 1.0, %v4890_v48  ;;  %vm640_vm0 = vcmp.eq.s32.totalorder %v3451_v39, %v3445_v36 }
  0xbc   : > { %4907 = vst [vmem:[#allocation8_spill] sm:$0xff] %v3536_v62  ;;  %v3549_v3 = vsel %vm967_vm11, 1.0, %v4890_v48  ;;  %v3552_v4 = vsel %vm968_vm12, 1.0, %v4890_v48  ;;  %v3555_v5 = vsel %vm636_vm13, 1.0, %v4890_v48  ;;  %v3567_v7 = vsel %vm638_vm14, 1.0, %v4890_v48 }
  0xbd   : > { %v3490_v51 = vpop.permute.xlu1 %909  ;;  %v3492_v52 = vpop.permute.xlu0 %1229  ;;  %4908 = vst [vmem:[#allocation9_spill] sm:$0xff] %v3549_v3  ;;  %4909 = vst [vmem:[#allocation10_spill] sm:$0xff] %v3552_v4  ;;  %v3577_v12 = vsel %vm640_vm0, 1.0, %v4890_v48 }
  0xbe   : > { %939 = vperm.xlu1 %2976, %v900_v40   ;;  %vm958_vm15 = vcmp.eq.s32.totalorder %v3448_v38, %v3490_v51  ;;  %vm1277_vm1 = vcmp.eq.s32.totalorder %v3438_v32, %v3492_v52  ;;  %vm1279_vm2 = vcmp.eq.s32.totalorder %v3442_v22, %v3492_v52  ;;  %vm960_vm3 = vcmp.eq.s32.totalorder %v3451_v39, %v3490_v51 }
  0xbf   : > { %vm957_vm4 = vcmp.eq.s32.totalorder %v3438_v32, %v3490_v51  ;;  %v3574_v9 = vsel %vm958_vm15, 1.0, %v4890_v48  ;;  %vm1278_vm8 = vcmp.eq.s32.totalorder %v3448_v38, %v3492_v52  ;;  %v3587_v14 = vsel %vm1277_vm1, 1.0, %v4890_v48 }
  0xc0   : > { %v3590_v15 = vsel %vm1279_vm2, 1.0, %v4890_v48  ;;  %v3595_v17 = vsel %vm960_vm3, 1.0, %v4890_v48  ;;  %vm1280_vm10 = vcmp.eq.s32.totalorder %v3451_v39, %v3492_v52  ;;  %v3616_v28 = vsel %vm1278_vm8, 1.0, %v4890_v48 }
  0xc1   : > { %v1239_v59 = vpop.permute.xlu0 %1238  ;;  %v3631_v34 = vsel %vm1280_vm10, 1.0, %v4890_v48  ;;  %v3650_v37 = vsel %vm957_vm4, 1.0, %v4890_v48 }
  0xc2   : > { %2977 = vset.pattern.permute.xlu1 %v4882_v18  ;;  %v3542_v2 = vpop.permute.xlu1 %1226  ;;  %vm1289_vm5 = vcmp.eq.s32.totalorder %v3438_v32, %v1239_v59  ;;  %vm1290_vm6 = vcmp.eq.s32.totalorder %v3448_v38, %v1239_v59  ;;  %vm1291_vm7 = vcmp.eq.s32.totalorder %v3442_v22, %v1239_v59  ;;  %vm1292_vm9 = vcmp.eq.s32.totalorder %v3451_v39, %v1239_v59 }
  0xc3   : > { %1259 = vperm.xlu1 %2977, %v1220_v41   ;;  %v3607_v10 = vsel %vm1289_vm5, 1.0, %v4890_v48  ;;  %v3610_v27 = vsel %vm1290_vm6, 1.0, %v4890_v48  ;;  %v3619_v29 = vsel %vm1292_vm9, 1.0, %v4890_v48  ;;  %vm1274_vm11 = vcmp.eq.s32.totalorder %v3448_v38, %v3542_v2 }
  0xc4   : > { %4910 = vst [vmem:[#allocation11_spill] sm:$0xff] %v3607_v10  ;;  %4911 = vst [vmem:[#allocation12_spill] sm:$0xff] %v3610_v27  ;;  %vm1276_vm12 = vcmp.eq.s32.totalorder %v3451_v39, %v3542_v2  ;;  %v3641_v35 = vsel %vm1274_vm11, 1.0, %v4890_v48  ;;  %vm959_vm6 = vcmp.eq.s32.totalorder %v3442_v22, %v3490_v51  ;;  %vm1273_vm4 = vcmp.eq.s32.totalorder %v3438_v32, %v3542_v2 }
  0xc5   : > { %v1248_v8 = vpop.permute.xlu0 %1247  ;;  %4913 = vst [vmem:[#allocation14_spill] sm:$0xff] %v3619_v29  ;;  %v3644_v36 = vsel %vm1276_vm12, 1.0, %v4890_v48  ;;  %v3780_v10 = vsel %vm959_vm6, 1.0, %v4890_v48 }
  0xc6   : > { %vm1301_vm13 = vcmp.eq.s32.totalorder %v3438_v32, %v1248_v8  ;;  %vm1302_vm14 = vcmp.eq.s32.totalorder %v3448_v38, %v1248_v8  ;;  %vm1303_vm15 = vcmp.eq.s32.totalorder %v3442_v22, %v1248_v8  ;;  %vm1304_vm0 = vcmp.eq.s32.totalorder %v3451_v39, %v1248_v8 }
  0xc7   : > { %2978 = vset.pattern.permute.xlu1 %v4881_v21  ;;  %v273_v16 = vpop.permute.xlu1 %272  ;;  %v3657_v40 = vsel %vm1301_vm13, 1.0, %v4890_v48  ;;  %v3662_v41 = vsel %vm1302_vm14, 1.0, %v4890_v48  ;;  %v3674_v59 = vsel %vm1304_vm0, 1.0, %v4890_v48 }
  0xc8   : > { %302 = vperm.xlu1 %2978, %v3405_v11   ;;  %v3613_v11 = vsel %vm1291_vm7, 1.0, %v4890_v48  ;;  %vm321_vm1 = vcmp.eq.s32.totalorder %v3438_v32, %v273_v16  ;;  %vm322_vm2 = vcmp.eq.s32.totalorder %v3448_v38, %v273_v16  ;;  %vm323_vm3 = vcmp.eq.s32.totalorder %v3442_v22, %v273_v16  ;;  %4914 = vst [vmem:[#allocation15_spill] sm:$0xff] %v3657_v40 }
  0xc9   : > { %4912 = vst [vmem:[#allocation13_spill] sm:$0xff] %v3613_v11  ;;  %vm324_vm5 = vcmp.eq.s32.totalorder %v3451_v39, %v273_v16  ;;  %4915 = vst [vmem:[#allocation16_spill] sm:$0xff] %v3662_v41  ;;  %v3679_v31 = vsel %vm321_vm1, 1.0, %v4890_v48  ;;  %v3684_v24 = vsel %vm322_vm2, 1.0, %v4890_v48  ;;  %v3689_v26 = vsel %vm323_vm3, 1.0, %v4890_v48 }
  0xca   : > { %v593_v30 = vpop.permute.xlu0 %592  ;;  %4917 = vst [vmem:[#allocation18_spill] sm:$0xff] %v3674_v59  ;;  %4918 = vst [vmem:[#allocation19_spill] sm:$0xff] %v3679_v31  ;;  %v3692_v20 = vsel %vm324_vm5, 1.0, %v4890_v48 }
  0xcb   : > { %v276_v33 = vpop.permute.xlu1 %275  ;;  %4919 = vst [vmem:[#allocation20_spill] sm:$0xff] %v3689_v26  ;;  %vm641_vm7 = vcmp.eq.s32.totalorder %v3438_v32, %v593_v30  ;;  %vm642_vm8 = vcmp.eq.s32.totalorder %v3448_v38, %v593_v30  ;;  %vm643_vm9 = vcmp.eq.s32.totalorder %v3442_v22, %v593_v30  ;;  %vm644_vm10 = vcmp.eq.s32.totalorder %v3451_v39, %v593_v30 }
  0xcc   : > { %2980 = vset.pattern.permute.xlu1 %v4880_v1  ;;  %vm325_vm11 = vcmp.eq.s32.totalorder %v3438_v32, %v276_v33  ;;  %vm326_vm12 = vcmp.eq.s32.totalorder %v3448_v38, %v276_v33  ;;  %vm327_vm13 = vcmp.eq.s32.totalorder %v3442_v22, %v276_v33  ;;  %vm328_vm14 = vcmp.eq.s32.totalorder %v3451_v39, %v276_v33 }
  0xcd   : > { %622 = vperm.xlu1 %2980, %v3459_v42   ;;  %v3667_v42 = vsel %vm1303_vm15, 1.0, %v4890_v48  ;;  %v3712_v13 = vsel %vm641_vm7, 1.0, %v4890_v48  ;;  %v3723_v30 = vsel %vm642_vm8, 1.0, %v4890_v48  ;;  %v3726_v33 = vsel %vm643_vm9, 1.0, %v4890_v48 }
  0xce   : > { %4916 = vst [vmem:[#allocation17_spill] sm:$0xff] %v3667_v42  ;;  %v602_v52 = vpop.permute.xlu0 %601  ;;  %4921 = vst [vmem:[#allocation22_spill] sm:$0xff] %v3712_v13  ;;  %v3729_v6 = vsel %vm644_vm10, 1.0, %v4890_v48  ;;  %v3732_v1 = vsel %vm325_vm11, 1.0, %v4890_v48  ;;  %v2446_v21 = vsel %vm326_vm12, 1.0, %v4890_v48  ;;  %v3736_v18 = vsel %vm327_vm13, 1.0, %v4890_v48 }
  0xcf   : > { %vm653_vm15 = vcmp.eq.s32.totalorder %v3438_v32, %v602_v52  ;;  %vm654_vm0 = vcmp.eq.s32.totalorder %v3448_v38, %v602_v52  ;;  %4922 = vst [vmem:[#allocation23_spill] sm:$0xff] %v3726_v33  ;;  %4923 = vst [vmem:[#allocation24_spill] sm:$0xff] %v3729_v6  ;;  %v3739_v0 = vsel %vm328_vm14, 1.0, %v4890_v48  ;;  %vm655_vm1 = vcmp.eq.s32.totalorder %v3442_v22, %v602_v52 }
  0xd0   : > { %v596_v8 = vpop.permute.xlu1 %595  ;;  %4924 = vst [vmem:[#allocation25_spill] sm:$0xff] %v3732_v1  ;;  %4925 = vst [vmem:[#allocation26_spill] sm:$0xff] %v3736_v18  ;;  %v4926_v42 = vmov 2   ;;  %vm656_vm2 = vcmp.eq.s32.totalorder %v3451_v39, %v602_v52  ;;  %v3747_v59 = vsel %vm653_vm15, 1.0, %v4890_v48  ;;  %v3750_v41 = vsel %vm654_vm0, 1.0, %v4890_v48 }
  0xd1   : > { %625 = vperm.xlu1 %2980, %v3462_v43   ;;  %v3720_v43 = vsel %vm1273_vm4, 1.0, %v4890_v48  ;;  %vm645_vm3 = vcmp.eq.s32.totalorder %v3438_v32, %v596_v8  ;;  %vm646_vm5 = vcmp.eq.s32.totalorder %v3448_v38, %v596_v8  ;;  %vm647_vm4 = vcmp.eq.s32.totalorder %v3442_v22, %v596_v8 }
  0xd2   : > { %v3707_v16 = vpop.permute.xlu0 %610  ;;  %vm648_vm7 = vcmp.eq.s32.totalorder %v3451_v39, %v596_v8  ;;  %v3762_v52 = vsel %vm655_vm1, 1.0, %v4890_v48  ;;  %vm1275_vm11 = vcmp.eq.s32.totalorder %v3442_v22, %v3542_v2  ;;  %v3774_v8 = vsel %vm645_vm3, 1.0, %v4890_v48 }
  0xd3   : > { %4920 = vst [vmem:[#allocation21_spill] sm:$0xff] %v3707_v16  ;;  %vm665_vm8 = vcmp.eq.s32.totalorder %v3438_v32, %v3707_v16  ;;  %4928 = vst [vmem:[#allocation28_spill] sm:$0xff] %v3762_v52  ;;  %vm666_vm9 = vcmp.eq.s32.totalorder %v3448_v38, %v3707_v16  ;;  %vm667_vm10 = vcmp.eq.s32.totalorder %v3442_v22, %v3707_v16  ;;  %v3784_v27 = vsel %vm646_vm5, 1.0, %v4890_v48 }
  0xd4   : > { %4930 = vst [vmem:[#allocation30_spill] sm:$0xff] %v3774_v8  ;;  %v510_v29 = vpack.c.bf16 %v2446_v21, %v3684_v24  ;;  %v3790_v16 = vsel %vm648_vm7, 1.0, %v4890_v48  ;;  %v3793_v3 = vsel %vm665_vm8, 1.0, %v4890_v48  ;;  %v4934_v33 = vmov 3  }
  0xd5   : > { %2982 = vset.pattern.permute.xlu1 %v4926_v42  ;;  %v3743_v40 = vpop.permute.xlu1 %912  ;;  %4932 = vst [vmem:[#allocation32_spill] sm:$0xff] %v3790_v16  ;;  %4933 = vst [vmem:[#allocation33_spill] sm:$0xff] %v3793_v3  ;;  %v3797_v51 = vsel %vm666_vm9, 1.0, %v4890_v48  ;;  %v3800_v21 = vsel %vm667_vm10, 1.0, %v4890_v48  ;;  %v3809_v3 = vsel %vm1275_vm11, 1.0, %v4890_v48  ;;  %v4937_v26 = vmov 0.0  }
  0xd6   : > { %945 = vperm.xlu1 %2982, %v3466_v44   ;;  %v3754_v11 = vpop.permute.xlu0 %619  ;;  %v3771_v44 = vsel %vm656_vm2, 1.0, %v4890_v48  ;;  %4935 = vst [vmem:[#allocation34_spill] sm:$0xff] %v3797_v51  ;;  %4936 = vst [vmem:[#allocation35_spill] sm:$0xff] %v3800_v21  ;;  %vm962_vm6 = vcmp.eq.s32.totalorder %v3448_v38, %v3743_v40  ;;  %v4942_v6 = vmov 1  }
  0xd7   : > { %4927 = vst [vmem:[#allocation27_spill] sm:$0xff] %v3754_v11  ;;  %4929 = vst [vmem:[#allocation29_spill] sm:$0xff] %v3771_v44  ;;  %v3787_v11 = vsel %vm647_vm4, 1.0, %v4890_v48  ;;  %v3828_v62 = vsel %vm962_vm6, 1.0, %v4937_v26 }
  0xd8   : > { %4931 = vst [vmem:[#allocation31_spill] sm:$0xff] %v3787_v11  ;;  %v4939_v11 = vmov 0  }
  0xda   : > { %2983 = vset.pattern.permute.xlu1 %v4934_v33  ;;  %v1233_v18 = vpop.permute.xlu1 %1232 }
  0xdb   : > { %v267_v24 = vpop.permute.xlu0 %266  ;;  %1262 = vperm.xlu1 %2983, %v3469_v45   ;;  %vm1281_vm12 = vcmp.eq.s32.totalorder %v3438_v32, %v1233_v18  ;;  %vm1282_vm13 = vcmp.eq.s32.totalorder %v3448_v38, %v1233_v18  ;;  %vm1283_vm14 = vcmp.eq.s32.totalorder %v3442_v22, %v1233_v18  ;;  %vm1284_vm15 = vcmp.eq.s32.totalorder %v3451_v39, %v1233_v18 }
  0xdc   : > { %v3819_v45 = vadd.bf16 0, %v510_v29  ;;  %v3835_v18 = vsel %vm1281_vm12, 1.0, %v4937_v26  ;;  %v3838_v29 = vsel %vm1282_vm13, 1.0, %v4937_v26  ;;  %vm313_vm0 = vcmp.eq.s32.totalorder %v3438_v32, %v267_v24 }
  0xdd   : > { %4938 = vst [vmem:[#allocation36_spill] sm:$0xff] %v3835_v18  ;;  %vm315_vm1 = vcmp.eq.s32.totalorder %v3442_v22, %v267_v24  ;;  %v3844_v8 = vsel %vm1283_vm14, 1.0, %v4937_v26  ;;  %v3847_v51 = vsel %vm1284_vm15, 1.0, %v4937_v26  ;;  %vm314_vm2 = vcmp.eq.s32.totalorder %v3448_v38, %v267_v24 }
  0xde   : > { %v3823_v48 = vpop.permute.xlu1 %1235  ;;  %4940 = vst [vmem:[#allocation37_spill] sm:$0xff] %v3844_v8  ;;  %4941 = vst [vmem:[#allocation38_spill] sm:$0xff] %v3847_v51  ;;  %vm316_vm3 = vcmp.eq.s32.totalorder %v3451_v39, %v267_v24  ;;  %v2435_v21 = vsel %vm315_vm1, 1.0, %v4937_v26  ;;  %v2434_v24 = vsel %vm314_vm2, 1.0, %v4937_v26 }
  0xdf   : > { %v270_v2 = vpop.permute.xlu0 %269  ;;  %2984 = vset.pattern.permute.xlu1 %v4939_v11  ;;  %v2433_v11 = vsel %vm313_vm0, 1.0, %v4937_v26  ;;  %vm1285_vm9 = vcmp.eq.s32.totalorder %v3438_v32, %v3823_v48  ;;  %vm1286_vm10 = vcmp.eq.s32.totalorder %v3448_v38, %v3823_v48  ;;  %vm1287_vm11 = vcmp.eq.s32.totalorder %v3442_v22, %v3823_v48 }
  0xe0   : > { %308 = vperm.xlu1 %2984, %v3416_v19   ;;  %vm317_vm5 = vcmp.eq.s32.totalorder %v3438_v32, %v270_v2  ;;  %vm318_vm4 = vcmp.eq.s32.totalorder %v3448_v38, %v270_v2  ;;  %vm319_vm7 = vcmp.eq.s32.totalorder %v3442_v22, %v270_v2  ;;  %vm320_vm8 = vcmp.eq.s32.totalorder %v3451_v39, %v270_v2 }
  0xe1   : > { %v2437_v8 = vsel %vm317_vm5, 1.0, %v4937_v26  ;;  %v2439_v18 = vsel %vm319_vm7, 1.0, %v4937_v26  ;;  %v2436_v19 = vsel %vm316_vm3, 1.0, %v4937_v26  ;;  %vm1288_vm6 = vcmp.eq.s32.totalorder %v3451_v39, %v3823_v48 }
  0xe2   : > { %v2438_v1 = vsel %vm318_vm4, 1.0, %v4937_v26  ;;  %v2440_v31 = vsel %vm320_vm8, 1.0, %v4937_v26  ;;  %v505_v53 = vpack.c.bf16 %v2437_v8, %v2433_v11  ;;  %v507_v44 = vpack.c.bf16 %v2439_v18, %v2435_v21 }
  0xe3   : > { %v279_v13 = vpop.permute.xlu0 %278  ;;  %v282_v2 = vpop.permute.xlu1 %281  ;;  %v506_v4 = vpack.c.bf16 %v2438_v1, %v2434_v24  ;;  %vm964_vm5 = vcmp.eq.s32.totalorder %v3451_v39, %v3743_v40  ;;  %v3897_v24 = vsel %vm1285_vm9, 1.0, %v4937_v26 }
  0xe4   : > { %311 = vperm.xlu1 %2984, %v3422_v25   ;;  %vm329_vm12 = vcmp.eq.s32.totalorder %v3438_v32, %v279_v13  ;;  %vm330_vm13 = vcmp.eq.s32.totalorder %v3448_v38, %v279_v13  ;;  %vm331_vm14 = vcmp.eq.s32.totalorder %v3442_v22, %v279_v13  ;;  %vm332_vm15 = vcmp.eq.s32.totalorder %v3451_v39, %v279_v13 }
  0xe5   : > { %vm333_vm0 = vcmp.eq.s32.totalorder %v3438_v32, %v282_v2  ;;  %vm334_vm1 = vcmp.eq.s32.totalorder %v3448_v38, %v282_v2  ;;  %vm335_vm2 = vcmp.eq.s32.totalorder %v3442_v22, %v282_v2  ;;  %vm336_vm3 = vcmp.eq.s32.totalorder %v3451_v39, %v282_v2  ;;  %4943 = vst [vmem:[#allocation39_spill] sm:$0xff] %v3897_v24 }
  0xe6   : > { %v508_v25 = vpack.c.bf16 %v2440_v31, %v2436_v19  ;;  %v2449_v8 = vsel %vm329_vm12, 1.0, %v4937_v26  ;;  %v2450_v21 = vsel %vm330_vm13, 1.0, %v4937_v26  ;;  %v2453_v18 = vsel %vm333_vm0, 1.0, %v4937_v26 }
  0xe7   : > { %v2454_v11 = vsel %vm334_vm1, 1.0, %v4937_v26  ;;  %v2451_v16 = vsel %vm331_vm14, 1.0, %v4937_v26  ;;  %v2452_v2 = vsel %vm332_vm15, 1.0, %v4937_v26  ;;  %v2455_v1 = vsel %vm335_vm2, 1.0, %v4937_v26 }
  0xe8   : > { %2986 = vset.pattern.permute.xlu1 %v4942_v6  ;;  %v599_v13 = vpop.permute.xlu1 %598  ;;  %v2456_v31 = vsel %vm336_vm3, 1.0, %v4937_v26  ;;  %v3903_v6 = vsel %vm1286_vm10, 1.0, %v4937_v26  ;;  %v537_v19 = vadd.bf16 0, %v505_v53  ;;  %v539_v51 = vadd.bf16 0, %v507_v44 }
  0xe9   : > { %631 = vperm.xlu1 %2986, %v3472_v23   ;;  %v513_v52 = vpack.c.bf16 %v2453_v18, %v2449_v8  ;;  %v514_v47 = vpack.c.bf16 %v2454_v11, %v2450_v21  ;;  %vm649_vm4 = vcmp.eq.s32.totalorder %v3438_v32, %v599_v13  ;;  %vm650_vm7 = vcmp.eq.s32.totalorder %v3448_v38, %v599_v13 }
  0xea   : > { %v3911_v23 = vsel %vm1287_vm11, 1.0, %v4937_v26  ;;  %v3917_v24 = vsel %vm1288_vm6, 1.0, %v4937_v26  ;;  %v515_v53 = vpack.c.bf16 %v2455_v1, %v2451_v16  ;;  %v516_v44 = vpack.c.bf16 %v2456_v31, %v2452_v2 }
  0xeb   : > { %4944 = vst [vmem:[#allocation40_spill] sm:$0xff] %v3911_v23  ;;  %vm651_vm8 = vcmp.eq.s32.totalorder %v3442_v22, %v599_v13  ;;  %vm652_vm9 = vcmp.eq.s32.totalorder %v3451_v39, %v599_v13  ;;  %v538_v8 = vadd.bf16 0, %v506_v4  ;;  %v540_v21 = vadd.bf16 0, %v508_v25 }
  0xec   : > { %vm961_vm10 = vcmp.eq.s32.totalorder %v3438_v32, %v3743_v40  ;;  %v3927_v11 = vsel %vm649_vm4, 1.0, %v4937_v26  ;;  %v3930_v48 = vsel %vm650_vm7, 1.0, %v4937_v26  ;;  %v4946_v16 = vpack.c.bf16 %v3517_v57, %v3483_v49 }
  0xed   : > { %2987 = vset.pattern.permute.xlu1 %v4926_v42  ;;  %v3922_v18 = vpop.permute.xlu1 %918  ;;  %v4947_v4 = vpack.c.bf16 %v3523_v58, %v3486_v50  ;;  %v3939_v42 = vadd.bf16 0, %v513_v52  ;;  %v3941_v1 = vadd.bf16 0, %v514_v47  ;;  %v4948_v31 = vpack.c.bf16 %v3567_v7, %v3528_v60 }
  0xee   : > { %4945 = vst [vmem:[#allocation41_spill] sm:$0xff] %v3922_v18  ;;  %v857_v2 = vadd.bf16 %v4946_v16, %v537_v19  ;;  %948 = vperm.xlu1 %2987, %v3477_v46   ;;  %v4949_v38 = vpack.c.bf16 %v3577_v12, %v3555_v5  ;;  %vm963_vm11 = vcmp.eq.s32.totalorder %v3442_v22, %v3743_v40  ;;  %v3954_v49 = vsel %vm651_vm8, 1.0, %v4937_v26  ;;  %v4969_v16 = vld [vmem:[#allocation5_spill] sm:$0xff] }
  0xef   : > { %v859_v25 = vadd.bf16 %v4947_v4, %v539_v51  ;;  %v858_v23 = vadd.bf16 %v4948_v31, %v538_v8  ;;  %v3959_v46 = vsel %vm652_vm9, 1.0, %v4937_v26  ;;  %v4950_v47 = vpack.c.bf16 %v3650_v37, %v3501_v54  ;;  %v4967_v8 = vld [vmem:[#allocation29_spill] sm:$0xff] }
  0xf0   : > { %v860_v18 = vadd.bf16 %v4949_v38, %v540_v21  ;;  %v4951_v38 = vpack.c.bf16 %v3780_v10, %v3507_v55  ;;  %v833_v58 = vpack.c.bf16 %v3747_v59, %v3927_v11  ;;  %v834_v60 = vpack.c.bf16 %v3750_v41, %v3930_v48  ;;  %v4972_v31 = vld [vmem:[#allocation25_spill] sm:$0xff] }
  0xf1   : > { %v1177_v50 = vadd.bf16 %v4950_v47, %v857_v2  ;;  %v4952_v5 = vpack.c.bf16 %v3574_v9, %v3514_v56  ;;  %v4953_v12 = vpack.c.bf16 %v3595_v17, %v3533_v61  ;;  %v922_v54 = vpop.permute.xlu1 %921  ;;  %v4954_v37 = vpack.c.bf16 %v3587_v14, %v3720_v43  ;;  %v4960_v43 = vld [vmem:[#allocation6_spill] sm:$0xff]  ;;  %v4970_v2 = vld [vmem:[#allocation7_spill] sm:$0xff] }
  0xf2   : > { %v1179_v57 = vadd.bf16 %v4951_v38, %v859_v25  ;;  %v4955_v10 = vpack.c.bf16 %v3590_v15, %v3809_v3  ;;  %v4956_v13 = vpack.c.bf16 %v3784_v27, %v3723_v30  ;;  %v1150_v56 = vpack.c.bf16 %v3539_v63, %v3828_v62  ;;  %2989 = vset.pattern.permute.xlu1 %v4934_v33  ;;  %v4961_v62 = vld [vmem:[#allocation28_spill] sm:$0xff]  ;;  %v4971_v25 = vld [vmem:[#allocation19_spill] sm:$0xff]  ;;  %v4973_v38 = vld [vmem:[#allocation22_spill] sm:$0xff] }
  0xf3   : > { %v1178_v7 = vadd.bf16 %v4952_v5, %v858_v23  ;;  %v1180_v52 = vadd.bf16 %v4953_v12, %v860_v18  ;;  %v1497_v55 = vadd.bf16 %v4954_v37, %v1177_v50  ;;  %v4957_v61 = vpack.c.bf16 %v3616_v28, %v3641_v35  ;;  %1268 = vperm.xlu1 %2989, %v4960_v43   ;;  %v4981_v43 = vld [vmem:[#allocation39_spill] sm:$0xff] }
  0xf4   : > { %v1499_v51 = vadd.bf16 %v4955_v10, %v1179_v57  ;;  %v862_v19 = vadd.bf16 %v4956_v13, %v3819_v45  ;;  %v4958_v14 = vpack.c.bf16 %v3631_v34, %v3644_v36  ;;  %v1470_v3 = vpack.c.bf16 %v3903_v6, %v3838_v29  ;;  %v4962_v34 = vld [vmem:[#allocation38_spill] sm:$0xff]  ;;  %v4978_v13 = vld [vmem:[#allocation23_spill] sm:$0xff] }
  0xf5   : > { %v1498_v9 = vadd.bf16 %v4957_v61, %v1178_v7  ;;  %v4959_v15 = vpack.c.bf16 %v3739_v0, %v3692_v20  ;;  %v835_v63 = vpack.c.bf16 %v4961_v62, %v3954_v49  ;;  %v2572_v28 = vsel %vm964_vm5, 1.0, %v4937_v26  ;;  %v4963_v0 = vld [vmem:[#allocation32_spill] sm:$0xff]  ;;  %v4966_v29 = vld [vmem:[#allocation10_spill] sm:$0xff] }
  0xf6   : > { %v1500_v17 = vadd.bf16 %v4958_v14, %v1180_v52  ;;  %v1182_v30 = vadd.bf16 %v1150_v56, %v862_v19  ;;  %v1472_v35 = vpack.c.bf16 %v3917_v24, %v4962_v34  ;;  %v4010_v36 = vadd.bf16 0, %v515_v53  ;;  %v4964_v20 = vld [vmem:[#allocation24_spill] sm:$0xff]  ;;  %v4968_v24 = vld [vmem:[#allocation41_spill] sm:$0xff]  ;;  %v4023_v18 = vpop.permute.xlu1 %1241  ;;  %v4974_v57 = vld [vmem:[#allocation30_spill] sm:$0xff] }
  0xf7   : > { %v544_v27 = vadd.bf16 0, %v4959_v15  ;;  %1824 = vmatprep.mubr.bf16.mxu0 %v1498_v9  ;;  %v4965_v33 = vpack.c.bf16 %v4963_v0, %v4964_v20  ;;  %v1152_v6 = vpack.c.bf16 %v4966_v29, %v2572_v28  ;;  %vm973_vm6 = vcmp.eq.s32.totalorder %v3438_v32, %v922_v54  ;;  %1271 = vperm.xlu1 %2989, %v4970_v2   ;;  %v4975_v52 = vld [vmem:[#allocation8_spill] sm:$0xff]  ;;  %v4977_v10 = vld [vmem:[#allocation26_spill] sm:$0xff]  ;;  %v4979_v19 = vld [vmem:[#allocation31_spill] sm:$0xff]  ;;  %v288_v0 = vpop.permute.xlu0 %287 }
  0xf8   : > { %1921 = vmatprep.mubr.bf16.mxu1 %v1500_v17  ;;  %v4017_v23 = vadd.bf16 0, %v516_v44  ;;  %v836_v21 = vpack.c.bf16 %v4967_v8, %v3959_v46  ;;  %1825 = vmatmul.mubr.bf16.vlgmr.msra.gmra.mrb[0].mxu0 %v1497_v55  ;;  %vm969_vm12 = vcmp.eq.s32.totalorder %v3438_v32, %v4968_v24  ;;  %v1502_v53 = vadd.bf16 %v1470_v3, %v1182_v30  ;;  %v4976_v55 = vld [vmem:[#allocation20_spill] sm:$0xff]  ;;  %v4982_v34 = vld [vmem:[#allocation9_spill] sm:$0xff] }
  0xf9   : > { %v864_v45 = vadd.bf16 %v4965_v33, %v544_v27  ;;  %1922 = vmatmul.mubr.bf16.vlgmr.msra.gmra.mrb[0].mxu1 %v1499_v51  ;;  %vm970_vm13 = vcmp.eq.s32.totalorder %v4969_v16, %v4968_v24  ;;  %vm971_vm14 = vcmp.eq.s32.totalorder %v3442_v22, %v4968_v24  ;;  %vm972_vm15 = vcmp.eq.s32.totalorder %v3451_v39, %v4968_v24  ;;  %v4980_v27 = vld [vmem:[#allocation36_spill] sm:$0xff] }
  0xfa   : > { %1832 = vmatprep.mubr.bf16.mxu0 %v1502_v53  ;;  %vm974_vm0 = vcmp.eq.s32.totalorder %v4969_v16, %v922_v54  ;;  %vm975_vm1 = vcmp.eq.s32.totalorder %v3442_v22, %v922_v54  ;;  %v4037_v4 = vsel %vm973_vm6, 1.0, %v4937_v26  ;;  %v509_v47 = vpack.c.bf16 %v4972_v31, %v4971_v25  ;;  %v4983_v53 = vld [vmem:[#allocation37_spill] sm:$0xff]  ;;  %v3024_v31 = vld [vmem:[#allocation2 + $0x8] sm:$0xff]  }
  0xfb   : > { %v1184_v44 = vadd.bf16 %v1152_v6, %v864_v45  ;;  %vm976_vm2 = vcmp.eq.s32.totalorder %v3451_v39, %v922_v54  ;;  %v829_v5 = vpack.c.bf16 %v4974_v57, %v4973_v38  ;;  %v2569_v7 = vsel %vm961_vm10, 1.0, %v4937_v26  ;;  %v4075_v3 = vpop.permute.xlu1 %284  ;;  %v3023_v25 = vld [vmem:[#allocation2] sm:$0xff]  }
  0xfc   : > { %v541_v12 = vadd.bf16 0, %v509_v47  ;;  %v1149_v37 = vpack.c.bf16 %v4975_v52, %v2569_v7  ;;  %v511_v51 = vpack.c.bf16 %v4977_v10, %v4976_v55  ;;  %v831_v56 = vpack.c.bf16 %v4979_v19, %v4978_v13  ;;  %v4985_v47 = vld [vmem:[#allocation21_spill] sm:$0xff]  ;;  %2877 = vmatprep.subr.bf16.mxu0 %v3023_v25  ;;  %2909 = vmatprep.subr.bf16.mxu1 %v3023_v25 }
  0xfd   : > { %v1504_v50 = vadd.bf16 %v1472_v35, %v1184_v44  ;;  %v4057_v61 = vsel %vm969_vm12, 1.0, %v4937_v26  ;;  %v4063_v9 = vsel %vm970_vm13, 1.0, %v4937_v26  ;;  %v4069_v14 = vsel %vm971_vm14, 1.0, %v4937_v26  ;;  %v4984_v44 = vld [vmem:[#allocation40_spill] sm:$0xff]  ;;  %2878 = vmatpush3.bf16.msra.mxu0 %v3023_v25  ;;  %2917 = vmatpush3.bf16.msra.mxu1 %v3023_v25 }
  0xfe   : > { %v2571_v17 = vsel %vm963_vm11, 1.0, %v4937_v26  ;;  %v861_v15 = vadd.bf16 %v829_v5, %v541_v12  ;;  %v1469_v30 = vpack.c.bf16 %v4981_v43, %v4980_v27  ;;  %v543_v28 = vadd.bf16 0, %v511_v51  ;;  %2879 = vmatprep.subr.bf16.mxu0 %v3024_v31  ;;  %v3025_v51 = vld [vmem:[#allocation2 + $0x10] sm:$0xff]   ;;  %2910 = vmatprep.subr.bf16.mxu1 %v3024_v31 }
  0xff   : > { %1929 = vmatprep.mubr.bf16.mxu1 %v1504_v50  ;;  %v1151_v35 = vpack.c.bf16 %v4982_v34, %v2571_v17  ;;  %v2582_v20 = vsel %vm974_vm0, 1.0, %v4937_v26  ;;  %v4086_v33 = vsel %vm975_vm1, 1.0, %v4937_v26  ;;  %v2584_v40 = vsel %vm976_vm2, 1.0, %v4937_v26  ;;  %v4986_v50 = vld [vmem:[#allocation27_spill] sm:$0xff] }
 0x100   : > { %v1153_v45 = vpack.c.bf16 %v4037_v4, %v4057_v61  ;;  %v1181_v29 = vadd.bf16 %v1149_v37, %v861_v15  ;;  %v863_v6 = vadd.bf16 %v831_v56, %v543_v28  ;;  %v1471_v2 = vpack.c.bf16 %v4984_v44, %v4983_v53  ;;  %v4117_v5 = vpop.permute.xlu1 %604 }
 0x101   : > { %vm1294_vm3 = vcmp.eq.s32.totalorder %v4969_v16, %v4023_v18  ;;  %vm668_vm5 = vcmp.eq.s32.totalorder %v3451_v39, %v4985_v47  ;;  %vm677_vm4 = vcmp.eq.s32.totalorder %v3438_v32, %v4986_v50  ;;  %vm678_vm7 = vcmp.eq.s32.totalorder %v4969_v16, %v4986_v50  ;;  %2880 = vmatpush3.bf16.msra.mxu0 %v3024_v31 }
 0x102   : > { %vm1293_vm8 = vcmp.eq.s32.totalorder %v3438_v32, %v4023_v18  ;;  %vm1295_vm9 = vcmp.eq.s32.totalorder %v3442_v22, %v4023_v18  ;;  %vm1296_vm10 = vcmp.eq.s32.totalorder %v3451_v39, %v4023_v18  ;;  %vm341_vm11 = vcmp.eq.s32.totalorder %v3438_v32, %v288_v0  ;;  %2918 = vmatpush3.bf16.msra.mxu1 %v3024_v31 }
 0x103   : > { %vm679_vm6 = vcmp.eq.s32.totalorder %v3442_v22, %v4986_v50  ;;  %v2580_v54 = vsel %vm972_vm15, 1.0, %v4937_v26  ;;  %v1501_v38 = vadd.bf16 %v1469_v30, %v1181_v29  ;;  %v1183_v57 = vadd.bf16 %v1151_v35, %v863_v6  ;;  %v4988_v30 = vld [vmem:[#allocation14_spill] sm:$0xff]  ;;  %2881 = vmatprep.subr.bf16.mxu0 %v3025_v51  ;;  %2911 = vmatprep.subr.bf16.mxu1 %v3025_v51 }
 0x104   : > { %vm342_vm12 = vcmp.eq.s32.totalorder %v4969_v16, %v288_v0  ;;  %v1154_v7 = vpack.c.bf16 %v2582_v20, %v4063_v9  ;;  %v1155_v12 = vpack.c.bf16 %v4086_v33, %v4069_v14  ;;  %v1156_v52 = vpack.c.bf16 %v2584_v40, %v2580_v54  ;;  %v4150_v9 = vpop.permute.xlu0 %296  ;;  %v4987_v14 = vld [vmem:[#allocation12_spill] sm:$0xff]  ;;  %v608_v15 = vpop.permute.xlu1 %607 }
 0x105   : > { %v2646_v24 = vsel %vm1294_vm3, 1.0, %v4937_v26  ;;  %1833 = vmatmul.mubr.bf16.gmra.mrb[4].mxu0 %v1501_v38  ;;  %v1503_v37 = vadd.bf16 %v1471_v2, %v1183_v57  ;;  %v2645_v55 = vsel %vm1293_vm8, 1.0, %v4937_v26  ;;  %v2648_v10 = vsel %vm1296_vm10, 1.0, %v4937_v26 }
 0x106   : > { %vm343_vm13 = vcmp.eq.s32.totalorder %v3442_v22, %v288_v0  ;;  %v2647_v13 = vsel %vm1295_vm9, 1.0, %v4937_v26  ;;  %vm344_vm14 = vcmp.eq.s32.totalorder %v3451_v39, %v288_v0  ;;  %v4143_v19 = vsel %vm341_vm11, 1.0, %v4937_v26  ;;  %2882 = vmatpush3.bf16.msra.mxu0 %v3025_v51  ;;  %2919 = vmatpush3.bf16.msra.mxu1 %v3025_v51 }
 0x107   : > { %v4148_v56 = vsel %vm342_vm12, 1.0, %v4937_v26  ;;  %1930 = vmatmul.mubr.bf16.gmra.mrb[4].mxu1 %v1503_v37  ;;  %vm337_vm15 = vcmp.eq.s32.totalorder %v3438_v32, %v4075_v3  ;;  %vm338_vm0 = vcmp.eq.s32.totalorder %v4969_v16, %v4075_v3  ;;  %v866_v18 = vadd.bf16 %v834_v60, %v3941_v1  ;;  %v4989_v60 = vld [vmem:[#allocation11_spill] sm:$0xff] }
 0x108   : > { %v1474_v17 = vpack.c.bf16 %v2646_v24, %v4987_v14  ;;  %v2463_v27 = vsel %vm343_vm13, 1.0, %v4937_v26  ;;  %vm339_vm1 = vcmp.eq.s32.totalorder %v3442_v22, %v4075_v3  ;;  %v868_v43 = vadd.bf16 %v836_v21, %v4017_v23  ;;  %v4990_v21 = vld [vmem:[#allocation13_spill] sm:$0xff] }
 0x109   : > { %v1476_v28 = vpack.c.bf16 %v2648_v10, %v4988_v30  ;;  %v2464_v41 = vsel %vm344_vm14, 1.0, %v4937_v26  ;;  %vm340_vm2 = vcmp.eq.s32.totalorder %v3451_v39, %v4075_v3  ;;  %v1186_v48 = vadd.bf16 %v1154_v7, %v866_v18  ;;  %v928_v0 = vpop.permute.xlu1 %927 }
 0x10a   : > { %v865_v1 = vadd.bf16 %v833_v58, %v3939_v42  ;;  %v1188_v46 = vadd.bf16 %v1156_v52, %v868_v43  ;;  %v1473_v23 = vpack.c.bf16 %v2645_v55, %v4989_v60  ;;  %v867_v8 = vadd.bf16 %v835_v63, %v4010_v36  ;;  %v4200_v36 = vpop.permute.xlu0 %305 }
 0x10b   : > { %v1475_v34 = vpack.c.bf16 %v2647_v13, %v4990_v21  ;;  %v2457_v35 = vsel %vm337_vm15, 1.0, %v4937_v26  ;;  %v2458_v59 = vsel %vm338_vm0, 1.0, %v4937_v26  ;;  %v1506_v11 = vadd.bf16 %v1474_v17, %v1186_v48 }
 0x10c   : > { %v1185_v42 = vadd.bf16 %v1153_v45, %v865_v1  ;;  %v2459_v49 = vsel %vm339_vm1, 1.0, %v4937_v26  ;;  %v2460_v58 = vsel %vm340_vm2, 1.0, %v4937_v26  ;;  %v1508_v62 = vadd.bf16 %v1476_v28, %v1188_v46 }
 0x10d   : > { %v1187_v63 = vadd.bf16 %v1155_v12, %v867_v8  ;;  %v4206_v20 = vsel %vm668_vm5, 1.0, %v4937_v26  ;;  %v4212_v4 = vsel %vm677_vm4, 1.0, %v4937_v26  ;;  %v4218_v61 = vsel %vm678_vm7, 1.0, %v4937_v26  ;;  %1840 = vmatprep.mubr.bf16.mxu0 %v1506_v11 }
 0x10e   : > { %v1505_v3 = vadd.bf16 %v1473_v23, %v1185_v42  ;;  %v4224_v33 = vsel %vm679_vm6, 1.0, %v4937_v26  ;;  %v517_v40 = vpack.c.bf16 %v4143_v19, %v2457_v35  ;;  %v518_v45 = vpack.c.bf16 %v4148_v56, %v2458_v59  ;;  %1937 = vmatprep.mubr.bf16.mxu1 %v1508_v62  ;;  %v1245_v25 = vpop.permute.xlu1 %1244  ;;  %v925_v57 = vpop.permute.xlu0 %924 }
 0x10f   : > { %v1507_v29 = vadd.bf16 %v1475_v34, %v1187_v63  ;;  %v519_v6 = vpack.c.bf16 %v2463_v27, %v2459_v49  ;;  %v520_v53 = vpack.c.bf16 %v2464_v41, %v2460_v58  ;;  %vm657_vm3 = vcmp.eq.s32.totalorder %v3438_v32, %v4117_v5  ;;  %v4991_v49 = vld [vmem:[#allocation16_spill] sm:$0xff]  ;;  %v4992_v63 = vld [vmem:[#allocation18_spill] sm:$0xff] }
 0x110   : > { %1841 = vmatmul.mubr.bf16.gmra.mrb[8].mxu0 %v1505_v3  ;;  %vm658_vm5 = vcmp.eq.s32.totalorder %v4969_v16, %v4117_v5  ;;  %vm659_vm4 = vcmp.eq.s32.totalorder %v3442_v22, %v4117_v5  ;;  %vm660_vm7 = vcmp.eq.s32.totalorder %v3451_v39, %v4117_v5  ;;  %vm661_vm8 = vcmp.eq.s32.totalorder %v3438_v32, %v608_v15 }
 0x111   : > { %1938 = vmatmul.mubr.bf16.gmra.mrb[8].mxu1 %v1507_v29  ;;  %vm662_vm9 = vcmp.eq.s32.totalorder %v4969_v16, %v608_v15  ;;  %vm663_vm10 = vcmp.eq.s32.totalorder %v3442_v22, %v608_v15  ;;  %vm664_vm11 = vcmp.eq.s32.totalorder %v3451_v39, %v608_v15  ;;  %v4241_v44 = vsel %vm661_vm8, 1.0, %v4937_v26 }
 0x112   : > { %v2526_v2 = vsel %vm662_vm9, 1.0, %v4937_v26  ;;  %v549_v31 = vadd.bf16 0, %v517_v40  ;;  %v550_v47 = vadd.bf16 0, %v518_v45  ;;  %v4245_v54 = vsel %vm663_vm10, 1.0, %v4937_v26  ;;  %v4993_v40 = vld [vmem:[#allocation15_spill] sm:$0xff] }
 0x113   : > { %v2528_v38 = vsel %vm664_vm11, 1.0, %v4937_v26  ;;  %v551_v7 = vadd.bf16 0, %v519_v6  ;;  %v552_v12 = vadd.bf16 0, %v520_v53  ;;  %v2521_v52 = vsel %vm657_vm3, 1.0, %v4937_v26  ;;  %v291_v5 = vpop.permute.xlu1 %290 }
 0x114   : > { %v2522_v24 = vsel %vm658_vm5, 1.0, %v4937_v26  ;;  %v2523_v37 = vsel %vm659_vm4, 1.0, %v4937_v26  ;;  %v2524_v55 = vsel %vm660_vm7, 1.0, %v4937_v26  ;;  %v837_v10 = vpack.c.bf16 %v4241_v44, %v2521_v52  ;;  %v4994_v44 = vld [vmem:[#allocation17_spill] sm:$0xff] }
 0x115   : > { %v838_v51 = vpack.c.bf16 %v2526_v2, %v2522_v24  ;;  %v839_v13 = vpack.c.bf16 %v4245_v54, %v2523_v37  ;;  %v840_v19 = vpack.c.bf16 %v2528_v38, %v2524_v55  ;;  %vm977_vm6 = vcmp.eq.s32.totalorder %v3438_v32, %v925_v57 }
 0x116   : > { %vm978_vm12 = vcmp.eq.s32.totalorder %v4969_v16, %v925_v57  ;;  %vm979_vm13 = vcmp.eq.s32.totalorder %v3442_v22, %v925_v57  ;;  %vm980_vm14 = vcmp.eq.s32.totalorder %v3451_v39, %v925_v57  ;;  %v2585_v56 = vsel %vm977_vm6, 1.0, %v4937_v26 }
 0x117   : > { %v2586_v18 = vsel %vm978_vm12, 1.0, %v4937_v26  ;;  %v2587_v14 = vsel %vm979_vm13, 1.0, %v4937_v26  ;;  %v2588_v17 = vsel %vm980_vm14, 1.0, %v4937_v26  ;;  %vm981_vm15 = vcmp.eq.s32.totalorder %v3438_v32, %v928_v0  ;;  %v294_v46 = vpop.permute.xlu1 %293 }
 0x118   : > { %vm982_vm0 = vcmp.eq.s32.totalorder %v4969_v16, %v928_v0  ;;  %vm983_vm1 = vcmp.eq.s32.totalorder %v3442_v22, %v928_v0  ;;  %vm984_vm2 = vcmp.eq.s32.totalorder %v3451_v39, %v928_v0  ;;  %v2589_v15 = vsel %vm981_vm15, 1.0, %v4937_v26 }
 0x119   : > { %v2590_v27 = vsel %vm982_vm0, 1.0, %v4937_v26  ;;  %v2591_v43 = vsel %vm983_vm1, 1.0, %v4937_v26  ;;  %v2592_v30 = vsel %vm984_vm2, 1.0, %v4937_v26  ;;  %v1157_v28 = vpack.c.bf16 %v2589_v15, %v2585_v56 }
 0x11a   : > { %v1158_v41 = vpack.c.bf16 %v2590_v27, %v2586_v18  ;;  %vm680_vm3 = vcmp.eq.s32.totalorder %v3451_v39, %v4986_v50  ;;  %v1159_v48 = vpack.c.bf16 %v2591_v43, %v2587_v14  ;;  %v1160_v1 = vpack.c.bf16 %v2592_v30, %v2588_v17  ;;  %v934_v50 = vpop.permute.xlu0 %933 }
 0x11b   : > { %vm1297_vm5 = vcmp.eq.s32.totalorder %v3438_v32, %v1245_v25  ;;  %vm1298_vm4 = vcmp.eq.s32.totalorder %v4969_v16, %v1245_v25  ;;  %vm353_vm7 = vcmp.eq.s32.totalorder %v3438_v32, %v4150_v9  ;;  %vm354_vm8 = vcmp.eq.s32.totalorder %v4969_v16, %v4150_v9 }
 0x11c   : > { %vm1299_vm9 = vcmp.eq.s32.totalorder %v3442_v22, %v1245_v25  ;;  %vm1300_vm10 = vcmp.eq.s32.totalorder %v3451_v39, %v1245_v25  ;;  %v2649_v60 = vsel %vm1297_vm5, 1.0, %v4937_v26  ;;  %v2650_v23 = vsel %vm1298_vm4, 1.0, %v4937_v26  ;;  %v614_v29 = vpop.permute.xlu1 %613 }
 0x11d   : > { %vm355_vm11 = vcmp.eq.s32.totalorder %v3442_v22, %v4150_v9  ;;  %vm356_vm6 = vcmp.eq.s32.totalorder %v3451_v39, %v4150_v9  ;;  %v2651_v8 = vsel %vm1299_vm9, 1.0, %v4937_v26  ;;  %v2652_v21 = vsel %vm1300_vm10, 1.0, %v4937_v26 }
 0x11e   : > { %vm345_vm12 = vcmp.eq.s32.totalorder %v3438_v32, %v291_v5  ;;  %vm346_vm13 = vcmp.eq.s32.totalorder %v4969_v16, %v291_v5  ;;  %vm347_vm14 = vcmp.eq.s32.totalorder %v3442_v22, %v291_v5  ;;  %vm348_vm15 = vcmp.eq.s32.totalorder %v3451_v39, %v291_v5 }
 0x11f   : > { %v2465_v34 = vsel %vm345_vm12, 1.0, %v4937_v26  ;;  %v2466_v35 = vsel %vm346_vm13, 1.0, %v4937_v26  ;;  %v2467_v59 = vsel %vm347_vm14, 1.0, %v4937_v26  ;;  %v2468_v11 = vsel %vm348_vm15, 1.0, %v4937_v26 }
 0x120   : > { %v870_v42 = vadd.bf16 %v838_v51, %v550_v47  ;;  %v1478_v58 = vpack.c.bf16 %v4991_v49, %v2650_v23  ;;  %v872_v62 = vadd.bf16 %v840_v19, %v552_v12  ;;  %v1480_v0 = vpack.c.bf16 %v4992_v63, %v2652_v21  ;;  %v4997_v63 = vld [vmem:[#allocation35_spill] sm:$0xff] }
 0x121   : > { %v869_v3 = vadd.bf16 %v837_v10, %v549_v31  ;;  %v1477_v45 = vpack.c.bf16 %v4993_v40, %v2649_v60  ;;  %v871_v53 = vadd.bf16 %v839_v13, %v551_v7  ;;  %v1479_v2 = vpack.c.bf16 %v4994_v44, %v2651_v8  ;;  %v931_v51 = vpop.permute.xlu1 %930 }
 0x122   : > { %v1190_v6 = vadd.bf16 %v1158_v41, %v870_v42  ;;  %vm349_vm0 = vcmp.eq.s32.totalorder %v3438_v32, %v294_v46  ;;  %v1192_v25 = vadd.bf16 %v1160_v1, %v872_v62  ;;  %vm350_vm1 = vcmp.eq.s32.totalorder %v4969_v16, %v294_v46 }
 0x123   : > { %v1189_v54 = vadd.bf16 %v1157_v28, %v869_v3  ;;  %vm351_vm2 = vcmp.eq.s32.totalorder %v3442_v22, %v294_v46  ;;  %v1191_v38 = vadd.bf16 %v1159_v48, %v871_v53  ;;  %vm352_vm5 = vcmp.eq.s32.totalorder %v3451_v39, %v294_v46  ;;  %v4995_v46 = vld [vmem:[#allocation33_spill] sm:$0xff] }
 0x124   : > { %v1510_v47 = vadd.bf16 %v1478_v58, %v1190_v6  ;;  %v2469_v31 = vsel %vm349_vm0, 1.0, %v4937_v26  ;;  %v1512_v57 = vadd.bf16 %v1480_v0, %v1192_v25  ;;  %v2470_v7 = vsel %vm350_vm1, 1.0, %v4937_v26  ;;  %v4996_v58 = vld [vmem:[#allocation34_spill] sm:$0xff] }
 0x125   : > { %v1509_v12 = vadd.bf16 %v1477_v45, %v1189_v54  ;;  %v2471_v52 = vsel %vm351_vm2, 1.0, %v4937_v26  ;;  %v1511_v24 = vadd.bf16 %v1479_v2, %v1191_v38  ;;  %v2472_v37 = vsel %vm352_vm5, 1.0, %v4937_v26 }
 0x126   : > { %1848 = vmatprep.mubr.bf16.mxu0 %v1510_v47  ;;  %v521_v55 = vpack.c.bf16 %v2469_v31, %v2465_v34  ;;  %v522_v10 = vpack.c.bf16 %v2470_v7, %v2466_v35  ;;  %v4324_v13 = vsel %vm680_vm3, 1.0, %v4937_v26  ;;  %1945 = vmatprep.mubr.bf16.mxu1 %v1512_v57  ;;  %v523_v19 = vpack.c.bf16 %v2471_v52, %v2467_v59  ;;  %v1251_v1 = vpop.permute.xlu1 %1250 }
 0x127   : > { %1849 = vmatmul.mubr.bf16.gmra.mrb[12].mxu0 %v1509_v12  ;;  %v524_v56 = vpack.c.bf16 %v2472_v37, %v2468_v11  ;;  %vm669_vm4 = vcmp.eq.s32.totalorder %v3438_v32, %v614_v29  ;;  %v4331_v18 = vsel %vm353_vm7, 1.0, %v4937_v26  ;;  %v4337_v5 = vsel %vm354_vm8, 1.0, %v4937_v26  ;;  %1946 = vmatmul.mubr.bf16.gmra.mrb[12].mxu1 %v1511_v24 }
 0x128   : > { %vm670_vm3 = vcmp.eq.s32.totalorder %v4969_v16, %v614_v29  ;;  %vm671_vm9 = vcmp.eq.s32.totalorder %v3442_v22, %v614_v29  ;;  %v4345_v14 = vsel %vm355_vm11, 1.0, %v4937_v26  ;;  %v4351_v17 = vsel %vm356_vm6, 1.0, %v4937_v26 }
 0x129   : > { %vm672_vm7 = vcmp.eq.s32.totalorder %v3451_v39, %v614_v29  ;;  %v4355_v15 = vsel %vm669_vm4, 1.0, %v4937_v26  ;;  %v4357_v27 = vadd.bf16 0, %v521_v55  ;;  %v554_v43 = vadd.bf16 0, %v522_v10 }
 0x12a   : > { %v4359_v30 = vadd.bf16 0, %v523_v19  ;;  %v556_v28 = vadd.bf16 0, %v524_v56  ;;  %v2534_v41 = vsel %vm670_vm3, 1.0, %v4937_v26  ;;  %v4363_v48 = vsel %vm671_vm9, 1.0, %v4937_v26  ;;  %v1254_v49 = vpop.permute.xlu1 %1253 }
 0x12b   : > { %v2536_v9 = vsel %vm672_vm7, 1.0, %v4937_v26  ;;  %vm989_vm8 = vcmp.eq.s32.totalorder %v3438_v32, %v934_v50  ;;  %v841_v60 = vpack.c.bf16 %v4355_v15, %v4995_v46  ;;  %vm990_vm10 = vcmp.eq.s32.totalorder %v4969_v16, %v934_v50 }
 0x12c   : > { %vm991_vm11 = vcmp.eq.s32.totalorder %v3442_v22, %v934_v50  ;;  %vm992_vm6 = vcmp.eq.s32.totalorder %v3451_v39, %v934_v50  ;;  %v4373_v23 = vsel %vm989_vm8, 1.0, %v4937_v26  ;;  %v2598_v8 = vsel %vm990_vm10, 1.0, %v4937_v26 }
 0x12d   : > { %v4377_v21 = vsel %vm991_vm11, 1.0, %v4937_v26  ;;  %vm985_vm12 = vcmp.eq.s32.totalorder %v3438_v32, %v931_v51  ;;  %vm986_vm13 = vcmp.eq.s32.totalorder %v4969_v16, %v931_v51  ;;  %vm987_vm14 = vcmp.eq.s32.totalorder %v3442_v22, %v931_v51 }
 0x12e   : > { %vm988_vm15 = vcmp.eq.s32.totalorder %v3451_v39, %v931_v51  ;;  %v4384_v34 = vsel %vm985_vm12, 1.0, %v4937_v26  ;;  %v2600_v35 = vsel %vm992_vm6, 1.0, %v4937_v26  ;;  %v2594_v59 = vsel %vm986_vm13, 1.0, %v4937_v26 }
 0x12f   : > { %v4389_v11 = vsel %vm987_vm14, 1.0, %v4937_v26  ;;  %v2596_v42 = vsel %vm988_vm15, 1.0, %v4937_v26  ;;  %v842_v62 = vpack.c.bf16 %v2534_v41, %v4996_v58  ;;  %v843_v0 = vpack.c.bf16 %v4363_v48, %v4997_v63  ;;  %v300_v25 = vpop.permute.xlu1 %299 }
 0x130   : > { %v844_v3 = vpack.c.bf16 %v2536_v9, %v4206_v20  ;;  %vm1305_vm0 = vcmp.eq.s32.totalorder %v3438_v32, %v1251_v1  ;;  %v1161_v40 = vpack.c.bf16 %v4373_v23, %v4384_v34  ;;  %v1162_v45 = vpack.c.bf16 %v2598_v8, %v2594_v59 }
 0x131   : > { %v1163_v29 = vpack.c.bf16 %v4377_v21, %v4389_v11  ;;  %vm1306_vm1 = vcmp.eq.s32.totalorder %v4969_v16, %v1251_v1  ;;  %vm365_vm2 = vcmp.eq.s32.totalorder %v3438_v32, %v4200_v36  ;;  %vm366_vm5 = vcmp.eq.s32.totalorder %v4969_v16, %v4200_v36 }
 0x132   : > { %v1164_v6 = vpack.c.bf16 %v2600_v35, %v2596_v42  ;;  %vm1307_vm4 = vcmp.eq.s32.totalorder %v3442_v22, %v1251_v1  ;;  %vm1308_vm3 = vcmp.eq.s32.totalorder %v3451_v39, %v1251_v1  ;;  %v2657_v20 = vsel %vm1305_vm0, 1.0, %v4937_v26 }
 0x133   : > { %v2658_v53 = vsel %vm1306_vm1, 1.0, %v4937_v26  ;;  %vm1309_vm9 = vcmp.eq.s32.totalorder %v3438_v32, %v1254_v49  ;;  %vm1310_vm7 = vcmp.eq.s32.totalorder %v4969_v16, %v1254_v49  ;;  %vm1312_vm8 = vcmp.eq.s32.totalorder %v3451_v39, %v1254_v49 }
 0x134   : > { %vm367_vm10 = vcmp.eq.s32.totalorder %v3442_v22, %v4200_v36  ;;  %vm368_vm11 = vcmp.eq.s32.totalorder %v3451_v39, %v4200_v36  ;;  %vm1311_vm6 = vcmp.eq.s32.totalorder %v3442_v22, %v1254_v49  ;;  %v2662_v44 = vsel %vm1310_vm7, 1.0, %v4937_v26  ;;  %v617_v41 = vpop.permute.xlu1 %616 }
 0x135   : > { %v2664_v2 = vsel %vm1312_vm8, 1.0, %v4937_v26  ;;  %v874_v54 = vadd.bf16 %v842_v62, %v554_v43  ;;  %vm357_vm12 = vcmp.eq.s32.totalorder %v3438_v32, %v300_v25  ;;  %vm358_vm13 = vcmp.eq.s32.totalorder %v4969_v16, %v300_v25 }
 0x136   : > { %vm359_vm14 = vcmp.eq.s32.totalorder %v3442_v22, %v300_v25  ;;  %vm360_vm15 = vcmp.eq.s32.totalorder %v3451_v39, %v300_v25  ;;  %v2477_v47 = vsel %vm357_vm12, 1.0, %v4937_v26  ;;  %v2478_v38 = vsel %vm358_vm13, 1.0, %v4937_v26 }
 0x137   : > { %v2479_v31 = vsel %vm359_vm14, 1.0, %v4937_v26  ;;  %v2480_v57 = vsel %vm360_vm15, 1.0, %v4937_v26  ;;  %v2659_v12 = vsel %vm1307_vm4, 1.0, %v4937_v26  ;;  %v2660_v7 = vsel %vm1308_vm3, 1.0, %v4937_v26 }
 0x138   : > { %v2661_v52 = vsel %vm1309_vm9, 1.0, %v4937_v26  ;;  %v2663_v24 = vsel %vm1311_vm6, 1.0, %v4937_v26  ;;  %v1194_v37 = vadd.bf16 %v1162_v45, %v874_v54  ;;  %v1482_v55 = vpack.c.bf16 %v2662_v44, %v2658_v53 }
 0x139   : > { %v876_v10 = vadd.bf16 %v844_v3, %v556_v28  ;;  %v1484_v51 = vpack.c.bf16 %v2664_v2, %v2660_v7  ;;  %v525_v19 = vpack.c.bf16 %v2477_v47, %v4331_v18  ;;  %v526_v56 = vpack.c.bf16 %v2478_v38, %v4337_v5  ;;  %v937_v35 = vpop.permute.xlu1 %936 }
 0x13a   : > { %v527_v50 = vpack.c.bf16 %v2479_v31, %v4345_v14  ;;  %v528_v43 = vpack.c.bf16 %v2480_v57, %v4351_v17  ;;  %v1514_v48 = vadd.bf16 %v1482_v55, %v1194_v37  ;;  %v873_v1 = vadd.bf16 %v841_v60, %v4357_v27 }
 0x13b   : > { %v1196_v9 = vadd.bf16 %v1164_v6, %v876_v10  ;;  %v1481_v23 = vpack.c.bf16 %v2661_v52, %v2657_v20  ;;  %v875_v28 = vadd.bf16 %v843_v0, %v4359_v30  ;;  %v1483_v8 = vpack.c.bf16 %v2663_v24, %v2659_v12  ;;  %v4468_v30 = vpop.permute.xlu0 %942 }
 0x13c   : > { %vm673_vm0 = vcmp.eq.s32.totalorder %v3438_v32, %v617_v41  ;;  %vm674_vm1 = vcmp.eq.s32.totalorder %v4969_v16, %v617_v41  ;;  %1856 = vmatprep.mubr.bf16.mxu0 %v1514_v48  ;;  %v1193_v5 = vadd.bf16 %v1161_v40, %v873_v1  ;;  %vm675_vm4 = vcmp.eq.s32.totalorder %v3442_v22, %v617_v41 }
 0x13d   : > { %v1516_v18 = vadd.bf16 %v1484_v51, %v1196_v9  ;;  %vm676_vm3 = vcmp.eq.s32.totalorder %v3451_v39, %v617_v41  ;;  %v4457_v14 = vsel %vm365_vm2, 1.0, %v4937_v26  ;;  %v4463_v17 = vsel %vm366_vm5, 1.0, %v4937_v26 }
 0x13e   : > { %v1195_v15 = vadd.bf16 %v1163_v29, %v875_v28  ;;  %v4466_v27 = vsel %vm673_vm0, 1.0, %v4937_v26  ;;  %v1513_v46 = vadd.bf16 %v1481_v23, %v1193_v5  ;;  %v2538_v60 = vsel %vm674_vm1, 1.0, %v4937_v26  ;;  %v940_v29 = vpop.permute.xlu1 %939 }
 0x13f   : > { %1953 = vmatprep.mubr.bf16.mxu1 %v1516_v18  ;;  %v4472_v21 = vsel %vm675_vm4, 1.0, %v4937_v26  ;;  %v2540_v34 = vsel %vm676_vm3, 1.0, %v4937_v26  ;;  %v4479_v59 = vsel %vm367_vm10, 1.0, %v4937_v26  ;;  %v4485_v11 = vsel %vm368_vm11, 1.0, %v4937_v26 }
 0x140   : > { %v1515_v42 = vadd.bf16 %v1483_v8, %v1195_v15  ;;  %vm993_vm2 = vcmp.eq.s32.totalorder %v3438_v32, %v937_v35  ;;  %v557_v49 = vadd.bf16 0, %v525_v19  ;;  %v558_v58 = vadd.bf16 0, %v526_v56  ;;  %1857 = vmatmul.mubr.bf16.gmra.mrb[16].mxu0 %v1513_v46 }
 0x141   : > { %v559_v62 = vadd.bf16 0, %v527_v50  ;;  %v560_v63 = vadd.bf16 0, %v528_v43  ;;  %v845_v0 = vpack.c.bf16 %v4212_v4, %v4466_v27  ;;  %v846_v3 = vpack.c.bf16 %v4218_v61, %v2538_v60  ;;  %v1257_v4 = vpop.permute.xlu0 %1256 }
 0x142   : > { %1954 = vmatmul.mubr.bf16.gmra.mrb[16].mxu1 %v1515_v42  ;;  %v847_v40 = vpack.c.bf16 %v4224_v33, %v4472_v21  ;;  %v848_v36 = vpack.c.bf16 %v4324_v13, %v2540_v34  ;;  %vm994_vm5 = vcmp.eq.s32.totalorder %v4969_v16, %v937_v35  ;;  %vm995_vm9 = vcmp.eq.s32.totalorder %v3442_v22, %v937_v35  ;;  %v1260_v31 = vpop.permute.xlu1 %1259 }
 0x143   : > { %vm996_vm7 = vcmp.eq.s32.totalorder %v3451_v39, %v937_v35  ;;  %v4498_v45 = vsel %vm993_vm2, 1.0, %v4937_v26  ;;  %vm997_vm8 = vcmp.eq.s32.totalorder %v3438_v32, %v940_v29  ;;  %vm998_vm10 = vcmp.eq.s32.totalorder %v4969_v16, %v940_v29 }
 0x144   : > { %vm999_vm11 = vcmp.eq.s32.totalorder %v3442_v22, %v940_v29  ;;  %vm1000_vm6 = vcmp.eq.s32.totalorder %v3451_v39, %v940_v29  ;;  %v2605_v61 = vsel %vm997_vm8, 1.0, %v4937_v26  ;;  %v2606_v33 = vsel %vm998_vm10, 1.0, %v4937_v26 }
 0x145   : > { %v2607_v13 = vsel %vm999_vm11, 1.0, %v4937_v26  ;;  %v2608_v6 = vsel %vm1000_vm6, 1.0, %v4937_v26  ;;  %v2602_v20 = vsel %vm994_vm5, 1.0, %v4937_v26  ;;  %v2603_v53 = vsel %vm995_vm9, 1.0, %v4937_v26 }
 0x146   : > { %v2604_v44 = vsel %vm996_vm7, 1.0, %v4937_v26  ;;  %v1165_v2 = vpack.c.bf16 %v2605_v61, %v4498_v45  ;;  %v1166_v25 = vpack.c.bf16 %v2606_v33, %v2602_v20  ;;  %v1167_v54 = vpack.c.bf16 %v2607_v13, %v2603_v53  ;;  %v3026_v33 = vld [vmem:[#allocation2 + $0x18] sm:$0xff]  }
 0x147   : > { %v1168_v47 = vpack.c.bf16 %v2608_v6, %v2604_v44  ;;  %vm1001_vm12 = vcmp.eq.s32.totalorder %v3438_v32, %v4468_v30  ;;  %vm1002_vm13 = vcmp.eq.s32.totalorder %v4969_v16, %v4468_v30  ;;  %vm1003_vm14 = vcmp.eq.s32.totalorder %v3442_v22, %v4468_v30  ;;  %v303_v43 = vpop.permute.xlu1 %302  ;;  %2883 = vmatprep.subr.bf16.mxu0 %v3026_v33 }
 0x148   : > { %vm1313_vm15 = vcmp.eq.s32.totalorder %v3438_v32, %v1257_v4  ;;  %vm1314_vm0 = vcmp.eq.s32.totalorder %v4969_v16, %v1257_v4  ;;  %vm1315_vm1 = vcmp.eq.s32.totalorder %v3442_v22, %v1257_v4  ;;  %vm1316_vm4 = vcmp.eq.s32.totalorder %v3451_v39, %v1257_v4  ;;  %2884 = vmatpush3.bf16.msra.mxu0 %v3026_v33 }
 0x149   : > { %v2665_v38 = vsel %vm1313_vm15, 1.0, %v4937_v26  ;;  %v2666_v57 = vsel %vm1314_vm0, 1.0, %v4937_v26  ;;  %v2667_v12 = vsel %vm1315_vm1, 1.0, %v4937_v26  ;;  %v2668_v7 = vsel %vm1316_vm4, 1.0, %v4937_v26  ;;  %2912 = vmatprep.subr.bf16.mxu1 %v3026_v33 }
 0x14a   : > { %vm1317_vm3 = vcmp.eq.s32.totalorder %v3438_v32, %v1260_v31  ;;  %vm1318_vm2 = vcmp.eq.s32.totalorder %v4969_v16, %v1260_v31  ;;  %vm1319_vm5 = vcmp.eq.s32.totalorder %v3442_v22, %v1260_v31  ;;  %vm1320_vm9 = vcmp.eq.s32.totalorder %v3451_v39, %v1260_v31  ;;  %2920 = vmatpush3.bf16.msra.mxu1 %v3026_v33  ;;  %v3030_v33 = vld [vmem:[#allocation2 + $0x38] sm:$0xff]  }
 0x14b   : > { %v2669_v52 = vsel %vm1317_vm3, 1.0, %v4937_v26  ;;  %v2670_v24 = vsel %vm1318_vm2, 1.0, %v4937_v26  ;;  %v2671_v37 = vsel %vm1319_vm5, 1.0, %v4937_v26  ;;  %v2672_v55 = vsel %vm1320_vm9, 1.0, %v4937_v26 }
 0x14c   : > { %v878_v10 = vadd.bf16 %v846_v3, %v558_v58  ;;  %v1486_v51 = vpack.c.bf16 %v2670_v24, %v2666_v57  ;;  %v880_v19 = vadd.bf16 %v848_v36, %v560_v63  ;;  %v1488_v56 = vpack.c.bf16 %v2672_v55, %v2668_v7 }
 0x14d   : > { %v877_v50 = vadd.bf16 %v845_v0, %v557_v49  ;;  %v1485_v48 = vpack.c.bf16 %v2669_v52, %v2665_v38  ;;  %v879_v9 = vadd.bf16 %v847_v40, %v559_v62  ;;  %v1487_v1 = vpack.c.bf16 %v2671_v37, %v2667_v12  ;;  %v4567_v62 = vpop.permute.xlu0 %1265 }
 0x14e   : > { %v1198_v41 = vadd.bf16 %v1166_v25, %v878_v10  ;;  %vm361_vm7 = vcmp.eq.s32.totalorder %v3438_v32, %v303_v43  ;;  %vm362_vm8 = vcmp.eq.s32.totalorder %v4969_v16, %v303_v43  ;;  %vm363_vm10 = vcmp.eq.s32.totalorder %v3442_v22, %v303_v43 }
 0x14f   : > { %vm364_vm11 = vcmp.eq.s32.totalorder %v3451_v39, %v303_v43  ;;  %v2481_v23 = vsel %vm361_vm7, 1.0, %v4937_v26  ;;  %v2482_v28 = vsel %vm362_vm8, 1.0, %v4937_v26  ;;  %v2483_v8 = vsel %vm363_vm10, 1.0, %v4937_v26 }
 0x150   : > { %v2484_v18 = vsel %vm364_vm11, 1.0, %v4937_v26  ;;  %v529_v5 = vpack.c.bf16 %v4457_v14, %v2481_v23  ;;  %v530_v15 = vpack.c.bf16 %v4463_v17, %v2482_v28  ;;  %v531_v27 = vpack.c.bf16 %v4479_v59, %v2483_v8  ;;  %v623_v59 = vpop.permute.xlu1 %622 }
 0x151   : > { %v532_v46 = vpack.c.bf16 %v4485_v11, %v2484_v18  ;;  %v1518_v60 = vadd.bf16 %v1486_v51, %v1198_v41  ;;  %v1200_v21 = vadd.bf16 %v1168_v47, %v880_v19  ;;  %v1197_v34 = vadd.bf16 %v1165_v2, %v877_v50  ;;  %v3027_v47 = vld [vmem:[#allocation2 + $0x20] sm:$0xff]  }
 0x152   : > { %v1199_v35 = vadd.bf16 %v1167_v54, %v879_v9  ;;  %vm1004_vm6 = vcmp.eq.s32.totalorder %v3451_v39, %v4468_v30  ;;  %v4552_v42 = vsel %vm1001_vm12, 1.0, %v4937_v26  ;;  %v4558_v14 = vsel %vm1002_vm13, 1.0, %v4937_v26  ;;  %2885 = vmatprep.subr.bf16.mxu0 %v3027_v47  ;;  %2913 = vmatprep.subr.bf16.mxu1 %v3027_v47 }
 0x153   : > { %v4564_v17 = vsel %vm1003_vm14, 1.0, %v4937_v26  ;;  %1864 = vmatprep.mubr.bf16.mxu0 %v1518_v60  ;;  %v1520_v11 = vadd.bf16 %v1488_v56, %v1200_v21  ;;  %v1517_v49 = vadd.bf16 %v1485_v48, %v1197_v34  ;;  %vm681_vm12 = vcmp.eq.s32.totalorder %v3438_v32, %v623_v59  ;;  %2886 = vmatpush3.bf16.msra.mxu0 %v3027_v47 }
 0x154   : > { %v1519_v58 = vadd.bf16 %v1487_v1, %v1199_v35  ;;  %v561_v63 = vadd.bf16 0, %v529_v5  ;;  %vm682_vm15 = vcmp.eq.s32.totalorder %v4969_v16, %v623_v59  ;;  %vm683_vm13 = vcmp.eq.s32.totalorder %v3442_v22, %v623_v59  ;;  %v626_v61 = vpop.permute.xlu1 %625  ;;  %2921 = vmatpush3.bf16.msra.mxu1 %v3027_v47  ;;  %v629_v35 = vpop.permute.xlu0 %628 }
 0x155   : > { %vm684_vm0 = vcmp.eq.s32.totalorder %v3451_v39, %v623_v59  ;;  %v562_v0 = vadd.bf16 0, %v530_v15  ;;  %v563_v3 = vadd.bf16 0, %v531_v27  ;;  %v564_v40 = vadd.bf16 0, %v532_v46  ;;  %1961 = vmatprep.mubr.bf16.mxu1 %v1520_v11  ;;  %1865 = vmatmul.mubr.bf16.gmra.mrb[20].mxu0 %v1517_v49 }
 0x156   : > { %v2545_v36 = vsel %vm681_vm12, 1.0, %v4937_v26  ;;  %1962 = vmatmul.mubr.bf16.gmra.mrb[20].mxu1 %v1519_v58  ;;  %v2546_v45 = vsel %vm682_vm15, 1.0, %v4937_v26  ;;  %v2547_v29 = vsel %vm683_vm13, 1.0, %v4937_v26  ;;  %v2548_v4 = vsel %vm684_vm0, 1.0, %v4937_v26  ;;  %v3029_v58 = vld [vmem:[#allocation2 + $0x30] sm:$0xff]  }
 0x157   : > { %vm1325_vm14 = vcmp.eq.s32.totalorder %v3438_v32, %v4567_v62  ;;  %vm685_vm1 = vcmp.eq.s32.totalorder %v3438_v32, %v626_v61  ;;  %vm686_vm4 = vcmp.eq.s32.totalorder %v4969_v16, %v626_v61  ;;  %vm687_vm3 = vcmp.eq.s32.totalorder %v3442_v22, %v626_v61 }
 0x158   : > { %vm688_vm2 = vcmp.eq.s32.totalorder %v3451_v39, %v626_v61  ;;  %v2549_v13 = vsel %vm685_vm1, 1.0, %v4937_v26  ;;  %v2550_v6 = vsel %vm686_vm4, 1.0, %v4937_v26  ;;  %v2551_v20 = vsel %vm687_vm3, 1.0, %v4937_v26  ;;  %v946_v31 = vpop.permute.xlu1 %945 }
 0x159   : > { %v2552_v53 = vsel %vm688_vm2, 1.0, %v4937_v26  ;;  %v849_v44 = vpack.c.bf16 %v2549_v13, %v2545_v36  ;;  %v850_v2 = vpack.c.bf16 %v2550_v6, %v2546_v45  ;;  %v851_v25 = vpack.c.bf16 %v2551_v20, %v2547_v29 }
 0x15a   : > { %v852_v54 = vpack.c.bf16 %v2552_v53, %v2548_v4  ;;  %v2612_v38 = vsel %vm1004_vm6, 1.0, %v4937_v26  ;;  %vm1326_vm5 = vcmp.eq.s32.totalorder %v4969_v16, %v4567_v62  ;;  %vm1327_vm9 = vcmp.eq.s32.totalorder %v3442_v22, %v4567_v62 }
 0x15b   : > { %vm1328_vm7 = vcmp.eq.s32.totalorder %v3451_v39, %v4567_v62  ;;  %v882_v57 = vadd.bf16 %v850_v2, %v562_v0  ;;  %v881_v7 = vadd.bf16 %v849_v44, %v561_v63  ;;  %v883_v52 = vadd.bf16 %v851_v25, %v563_v3  ;;  %v952_v0 = vpop.permute.xlu0 %951 }
 0x15c   : > { %v884_v12 = vadd.bf16 %v852_v54, %v564_v40  ;;  %vm1005_vm8 = vcmp.eq.s32.totalorder %v3438_v32, %v946_v31  ;;  %vm1006_vm10 = vcmp.eq.s32.totalorder %v4969_v16, %v946_v31  ;;  %vm1007_vm11 = vcmp.eq.s32.totalorder %v3442_v22, %v946_v31  ;;  %v1263_v9 = vpop.permute.xlu1 %1262 }
 0x15d   : > { %vm1008_vm6 = vcmp.eq.s32.totalorder %v3451_v39, %v946_v31  ;;  %v2613_v30 = vsel %vm1005_vm8, 1.0, %v4937_v26  ;;  %v2614_v24 = vsel %vm1006_vm10, 1.0, %v4937_v26  ;;  %v2615_v37 = vsel %vm1007_vm11, 1.0, %v4937_v26 }
 0x15e   : > { %v2616_v55 = vsel %vm1008_vm6, 1.0, %v4937_v26  ;;  %v1169_v10 = vpack.c.bf16 %v2613_v30, %v4552_v42  ;;  %v1170_v51 = vpack.c.bf16 %v2614_v24, %v4558_v14  ;;  %v1171_v19 = vpack.c.bf16 %v2615_v37, %v4564_v17  ;;  %v3028_v42 = vld [vmem:[#allocation2 + $0x28] sm:$0xff]  }
 0x15f   : > { %v1172_v56 = vpack.c.bf16 %v2616_v55, %v2612_v38  ;;  %v2677_v50 = vsel %vm1325_vm14, 1.0, %v4937_v26  ;;  %v2678_v43 = vsel %vm1326_vm5, 1.0, %v4937_v26  ;;  %v2679_v41 = vsel %vm1327_vm9, 1.0, %v4937_v26  ;;  %2887 = vmatprep.subr.bf16.mxu0 %v3028_v42  ;;  %2914 = vmatprep.subr.bf16.mxu1 %v3028_v42 }
 0x160   : > { %v2680_v48 = vsel %vm1328_vm7, 1.0, %v4937_v26  ;;  %v1202_v1 = vadd.bf16 %v1170_v51, %v882_v57  ;;  %v1201_v28 = vadd.bf16 %v1169_v10, %v881_v7  ;;  %v1203_v8 = vadd.bf16 %v1171_v19, %v883_v52  ;;  %v309_v14 = vpop.permute.xlu1 %308  ;;  %2888 = vmatpush3.bf16.msra.mxu0 %v3028_v42  ;;  %2922 = vmatpush3.bf16.msra.mxu1 %v3028_v42 }
 0x161   : > { %v1204_v23 = vadd.bf16 %v1172_v56, %v884_v12  ;;  %vm1321_vm12 = vcmp.eq.s32.totalorder %v3438_v32, %v1263_v9  ;;  %vm1322_vm15 = vcmp.eq.s32.totalorder %v4969_v16, %v1263_v9  ;;  %vm1323_vm13 = vcmp.eq.s32.totalorder %v3442_v22, %v1263_v9  ;;  %2889 = vmatprep.subr.bf16.mxu0 %v3029_v58 }
 0x162   : > { %vm1324_vm0 = vcmp.eq.s32.totalorder %v3451_v39, %v1263_v9  ;;  %v2673_v18 = vsel %vm1321_vm12, 1.0, %v4937_v26  ;;  %v2674_v5 = vsel %vm1322_vm15, 1.0, %v4937_v26  ;;  %v2675_v15 = vsel %vm1323_vm13, 1.0, %v4937_v26  ;;  %2915 = vmatprep.subr.bf16.mxu1 %v3029_v58 }
 0x163   : > { %v2676_v27 = vsel %vm1324_vm0, 1.0, %v4937_v26  ;;  %v1490_v46 = vpack.c.bf16 %v2678_v43, %v2674_v5  ;;  %v1489_v21 = vpack.c.bf16 %v2677_v50, %v2673_v18  ;;  %v1491_v34 = vpack.c.bf16 %v2679_v41, %v2675_v15 }
 0x164   : > { %v1492_v60 = vpack.c.bf16 %v2680_v48, %v2676_v27  ;;  %vm689_vm14 = vcmp.eq.s32.totalorder %v3438_v32, %v629_v35  ;;  %vm690_vm1 = vcmp.eq.s32.totalorder %v4969_v16, %v629_v35  ;;  %vm691_vm4 = vcmp.eq.s32.totalorder %v3442_v22, %v629_v35  ;;  %v312_v62 = vpop.permute.xlu1 %311  ;;  %2890 = vmatpush3.bf16.msra.mxu0 %v3029_v58 }
 0x165   : > { %v1522_v17 = vadd.bf16 %v1490_v46, %v1202_v1  ;;  %v1521_v11 = vadd.bf16 %v1489_v21, %v1201_v28  ;;  %v1523_v49 = vadd.bf16 %v1491_v34, %v1203_v8  ;;  %vm692_vm3 = vcmp.eq.s32.totalorder %v3451_v39, %v629_v35  ;;  %2891 = vmatprep.subr.bf16.mxu0 %v3030_v33 }
 0x166   : > { %v1524_v59 = vadd.bf16 %v1492_v60, %v1204_v23  ;;  %vm369_vm2 = vcmp.eq.s32.totalorder %v3438_v32, %v309_v14  ;;  %vm370_vm5 = vcmp.eq.s32.totalorder %v4969_v16, %v309_v14  ;;  %vm371_vm9 = vcmp.eq.s32.totalorder %v3442_v22, %v309_v14  ;;  %2923 = vmatpush3.bf16.msra.mxu1 %v3029_v58 }
 0x167   : > { %1872 = vmatprep.mubr.bf16.mxu0 %v1522_v17  ;;  %v4639_v63 = vsel %vm689_vm14, 1.0, %v4937_v26  ;;  %vm372_vm7 = vcmp.eq.s32.totalorder %v3451_v39, %v309_v14  ;;  %v4643_v3 = vsel %vm690_vm1, 1.0, %v4937_v26  ;;  %v4646_v40 = vsel %vm691_vm4, 1.0, %v4937_v26  ;;  %2916 = vmatprep.subr.bf16.mxu1 %v3030_v33 }
 0x168   : > { %1969 = vmatprep.mubr.bf16.mxu1 %v1524_v59  ;;  %1873 = vmatmul.mubr.bf16.gmra.mrb[24].mxu0 %v1521_v11  ;;  %v4649_v36 = vsel %vm692_vm3, 1.0, %v4937_v26  ;;  %vm373_vm8 = vcmp.eq.s32.totalorder %v3438_v32, %v312_v62  ;;  %vm374_vm10 = vcmp.eq.s32.totalorder %v4969_v16, %v312_v62  ;;  %vm375_vm11 = vcmp.eq.s32.totalorder %v3442_v22, %v312_v62  ;;  %v632_v44 = vpop.permute.xlu1 %631 }
 0x169   : > { %1970 = vmatmul.mubr.bf16.gmra.mrb[24].mxu1 %v1523_v49  ;;  %vm376_vm6 = vcmp.eq.s32.totalorder %v3451_v39, %v312_v62  ;;  %v2489_v45 = vsel %vm369_vm2, 1.0, %v4937_v26  ;;  %v2490_v29 = vsel %vm370_vm5, 1.0, %v4937_v26  ;;  %v2491_v4 = vsel %vm371_vm9, 1.0, %v4937_v26  ;;  %2892 = vmatpush3.bf16.msra.mxu0 %v3030_v33 }
 0x16a   : > { %vm1013_vm12 = vcmp.eq.s32.totalorder %v3438_v32, %v952_v0  ;;  %v2492_v61 = vsel %vm372_vm7, 1.0, %v4937_v26  ;;  %vm1014_vm15 = vcmp.eq.s32.totalorder %v4969_v16, %v952_v0  ;;  %vm1015_vm13 = vcmp.eq.s32.totalorder %v3442_v22, %v952_v0  ;;  %2924 = vmatpush3.bf16.msra.mxu1 %v3030_v33  ;;  %v4724_v33 = vld [vmem:[%s4873_s2] ss:$0 sm:$0xff] }
 0x16b   : > { %vm1016_vm0 = vcmp.eq.s32.totalorder %v3451_v39, %v952_v0  ;;  %v2493_v13 = vsel %vm373_vm8, 1.0, %v4937_v26  ;;  %v2494_v6 = vsel %vm374_vm10, 1.0, %v4937_v26  ;;  %v2495_v20 = vsel %vm375_vm11, 1.0, %v4937_v26 }
 0x16c   : > { %v2496_v53 = vsel %vm376_vm6, 1.0, %v4937_v26  ;;  %vm693_vm14 = vcmp.eq.s32.totalorder %v3438_v32, %v632_v44  ;;  %vm694_vm1 = vcmp.eq.s32.totalorder %v4969_v16, %v632_v44  ;;  %vm695_vm4 = vcmp.eq.s32.totalorder %v3442_v22, %v632_v44 }
 0x16d   : > { %vm696_vm3 = vcmp.eq.s32.totalorder %v3451_v39, %v632_v44  ;;  %v2557_v2 = vsel %vm693_vm14, 1.0, %v4937_v26  ;;  %v2558_v25 = vsel %vm694_vm1, 1.0, %v4937_v26  ;;  %v2559_v54 = vsel %vm695_vm4, 1.0, %v4937_v26  ;;  %v949_v19 = vpop.permute.xlu1 %948 }
 0x16e   : > { %v2560_v47 = vsel %vm696_vm3, 1.0, %v4937_v26  ;;  %v2621_v38 = vsel %vm1013_vm12, 1.0, %v4937_v26  ;;  %v2622_v31 = vsel %vm1014_vm15, 1.0, %v4937_v26  ;;  %v2623_v57 = vsel %vm1015_vm13, 1.0, %v4937_v26 }
 0x16f   : > { %v2624_v12 = vsel %vm1016_vm0, 1.0, %v4937_v26  ;;  %v533_v7 = vpack.c.bf16 %v2493_v13, %v2489_v45  ;;  %v534_v52 = vpack.c.bf16 %v2494_v6, %v2490_v29  ;;  %v535_v30 = vpack.c.bf16 %v2495_v20, %v2491_v4 }
 0x170   : > { %v536_v24 = vpack.c.bf16 %v2496_v53, %v2492_v61  ;;  %v853_v37 = vpack.c.bf16 %v2557_v2, %v4639_v63  ;;  %v854_v55 = vpack.c.bf16 %v2558_v25, %v4643_v3  ;;  %v855_v10 = vpack.c.bf16 %v2559_v54, %v4646_v40 }
 0x171   : > { %v856_v51 = vpack.c.bf16 %v2560_v47, %v4649_v36  ;;  %vm1009_vm2 = vcmp.eq.s32.totalorder %v3438_v32, %v949_v19  ;;  %vm1010_vm5 = vcmp.eq.s32.totalorder %v4969_v16, %v949_v19  ;;  %vm1011_vm9 = vcmp.eq.s32.totalorder %v3442_v22, %v949_v19 }
 0x172   : > { %vm1012_vm7 = vcmp.eq.s32.totalorder %v3451_v39, %v949_v19  ;;  %v2617_v56 = vsel %vm1009_vm2, 1.0, %v4937_v26  ;;  %v2618_v50 = vsel %vm1010_vm5, 1.0, %v4937_v26  ;;  %v2619_v43 = vsel %vm1011_vm9, 1.0, %v4937_v26  ;;  %v1269_v15 = vpop.permute.xlu1 %1268 }
 0x173   : > { %v2620_v41 = vsel %vm1012_vm7, 1.0, %v4937_v26  ;;  %v565_v48 = vadd.bf16 0, %v533_v7  ;;  %v566_v9 = vadd.bf16 0, %v534_v52  ;;  %v567_v1 = vadd.bf16 0, %v535_v30 }
 0x174   : > { %v568_v23 = vadd.bf16 0, %v536_v24  ;;  %v1173_v28 = vpack.c.bf16 %v2621_v38, %v2617_v56  ;;  %v1174_v8 = vpack.c.bf16 %v2622_v31, %v2618_v50  ;;  %v1175_v18 = vpack.c.bf16 %v2623_v57, %v2619_v43 }
 0x175   : > { %v1176_v5 = vpack.c.bf16 %v2624_v12, %v2620_v41  ;;  %v886_v27 = vadd.bf16 %v854_v55, %v566_v9  ;;  %v885_v60 = vadd.bf16 %v853_v37, %v565_v48  ;;  %v887_v21 = vadd.bf16 %v855_v10, %v567_v1 }
 0x176   : > { %v888_v46 = vadd.bf16 %v856_v51, %v568_v23  ;;  %vm1329_vm8 = vcmp.eq.s32.totalorder %v3438_v32, %v1269_v15  ;;  %vm1330_vm10 = vcmp.eq.s32.totalorder %v4969_v16, %v1269_v15  ;;  %vm1331_vm11 = vcmp.eq.s32.totalorder %v3442_v22, %v1269_v15  ;;  %v1272_v58 = vpop.permute.xlu1 %1271 }
 0x177   : > { %vm1332_vm6 = vcmp.eq.s32.totalorder %v3451_v39, %v1269_v15  ;;  %v1206_v34 = vadd.bf16 %v1174_v8, %v886_v27  ;;  %v1205_v42 = vadd.bf16 %v1173_v28, %v885_v60  ;;  %v1207_v14 = vadd.bf16 %v1175_v18, %v887_v21 }
 0x178   : > { %v1208_v35 = vadd.bf16 %v1176_v5, %v888_v46  ;;  %v2681_v17 = vsel %vm1329_vm8, 1.0, %v4937_v26  ;;  %v2682_v59 = vsel %vm1330_vm10, 1.0, %v4937_v26  ;;  %v2683_v11 = vsel %vm1331_vm11, 1.0, %v4937_v26 }
 0x179   : > { %v2684_v49 = vsel %vm1332_vm6, 1.0, %v4937_v26  ;;  %vm1333_vm12 = vcmp.eq.s32.totalorder %v3438_v32, %v1272_v58  ;;  %vm1334_vm15 = vcmp.eq.s32.totalorder %v4969_v16, %v1272_v58  ;;  %vm1335_vm13 = vcmp.eq.s32.totalorder %v3442_v22, %v1272_v58 }
 0x17a   : > { %vm1336_vm0 = vcmp.eq.s32.totalorder %v3451_v39, %v1272_v58  ;;  %v2685_v62 = vsel %vm1333_vm12, 1.0, %v4937_v26  ;;  %v2686_v63 = vsel %vm1334_vm15, 1.0, %v4937_v26  ;;  %v2687_v0 = vsel %vm1335_vm13, 1.0, %v4937_v26 }
 0x17b   : > { %v2688_v3 = vsel %vm1336_vm0, 1.0, %v4937_v26  ;;  %v1494_v40 = vpack.c.bf16 %v2686_v63, %v2682_v59  ;;  %v1493_v45 = vpack.c.bf16 %v2685_v62, %v2681_v17  ;;  %v1495_v29 = vpack.c.bf16 %v2687_v0, %v2683_v11 }
 0x17c   : > { %v1496_v36 = vpack.c.bf16 %v2688_v3, %v2684_v49 }
 0x17d   : > { %v1526_v4 = vadd.bf16 %v1494_v40, %v1206_v34  ;;  %v1525_v61 = vadd.bf16 %v1493_v45, %v1205_v42  ;;  %v1527_v16 = vadd.bf16 %v1495_v29, %v1207_v14 }
 0x17e   : > { %v1528_v32 = vadd.bf16 %v1496_v36, %v1208_v35 }
 0x17f   : > { %1880 = vmatprep.mubr.bf16.mxu0 %v1526_v4 }
 0x180   : > { %1977 = vmatprep.mubr.bf16.mxu1 %v1528_v32  ;;  %1881 = vmatmul.mubr.bf16.gmra.mrb[28].mxu0 %v1525_v61 }
 0x181   : > { %1978 = vmatmul.mubr.bf16.gmra.mrb[28].mxu1 %v1527_v16 }
 0x1cb   : > { %v2749_v22 = vpop.f32.mrb[0].mxu0 }
 0x1cc   : > { %v2813_v39 = vpop.f32.mrb[0].mxu1  ;;  %v2750_v26 = vpop.f32.mrb[1].mxu0 }
 0x1cd   : > { %v2814_v13 = vpop.f32.mrb[1].mxu1  ;;  %v2751_v6 = vadd.f32 %v2750_v26, %v2749_v22  ;;  %v2752_v53 = vpop.f32.mrb[2].mxu0 }
 0x1ce   : > { %v2815_v20 = vadd.f32 %v2814_v13, %v2813_v39  ;;  %v2816_v44 = vpop.f32.mrb[2].mxu1  ;;  %v2753_v2 = vpop.f32.mrb[3].mxu0 }
 0x1cf   : > { %v2817_v25 = vpop.f32.mrb[3].mxu1  ;;  %v1827_v54 = vadd.f32 %v2751_v6, %v4724_v33  ;;  %v2754_v47 = vadd.f32 %v2753_v2, %v2752_v53 }
 0x1d0   : > { %v2818_v38 = vadd.f32 %v2817_v25, %v2816_v44 }
 0x1d1   : > { %v1924_v31 = vadd.f32 %v2815_v20, %v1827_v54  ;;  %v1830_v57 = vadd.f32 %v2754_v47, %v4724_v33 }
 0x1d3   : > { %v1927_v12 = vadd.f32 %v2818_v38, %v1830_v57  ;;  %v1986_v7 = vmax.f32 %v1924_v31, 0.0 }
 0x1d5   : > { %v1987_v52 = vmax.f32 %v1927_v12, 0.0 }
 0x1d7   : > { %v2002_v24 = vpack.c.bf16 %v1987_v52, %v1986_v7 }
 0x1d8   : > { %v2755_v30 = vpop.f32.mrb[4].mxu0 }
 0x1d9   : > { %v2756_v37 = vpop.f32.mrb[5].mxu0  ;;  %2893 = vmatprep.mubr.bf16.mxu0 %v2002_v24 }
 0x1da   : > { %v2819_v55 = vpop.f32.mrb[4].mxu1  ;;  %v2757_v10 = vadd.f32 %v2756_v37, %v2755_v30  ;;  %v2758_v51 = vpop.f32.mrb[6].mxu0 }
 0x1db   : > { %v2820_v19 = vpop.f32.mrb[5].mxu1  ;;  %v2759_v56 = vpop.f32.mrb[7].mxu0 }
 0x1dc   : > { %v1835_v50 = vadd.f32 %v2757_v10, %v4724_v33  ;;  %v2821_v43 = vadd.f32 %v2820_v19, %v2819_v55  ;;  %v2822_v41 = vpop.f32.mrb[6].mxu1  ;;  %v2760_v48 = vadd.f32 %v2759_v56, %v2758_v51 }
 0x1dd   : > { %v2823_v9 = vpop.f32.mrb[7].mxu1 }
 0x1de   : > { %v1932_v1 = vadd.f32 %v2821_v43, %v1835_v50  ;;  %v1838_v23 = vadd.f32 %v2760_v48, %v4724_v33  ;;  %v2824_v28 = vadd.f32 %v2823_v9, %v2822_v41 }
 0x1e0   : > { %v1935_v8 = vadd.f32 %v2824_v28, %v1838_v23  ;;  %v1988_v18 = vmax.f32 %v1932_v1, 0.0 }
 0x1e2   : > { %v1989_v5 = vmax.f32 %v1935_v8, 0.0 }
 0x1e3   : > { %v2761_v15 = vpop.f32.mrb[8].mxu0 }
 0x1e4   : > { %v2825_v27 = vpop.f32.mrb[8].mxu1  ;;  %v2762_v46 = vpop.f32.mrb[9].mxu0  ;;  %v2003_v60 = vpack.c.bf16 %v1989_v5, %v1988_v18 }
 0x1e5   : > { %v2763_v21 = vadd.f32 %v2762_v46, %v2761_v15  ;;  %v2826_v34 = vpop.f32.mrb[9].mxu1  ;;  %v2764_v35 = vpop.f32.mrb[10].mxu0 }
 0x1e6   : > { %v2827_v42 = vadd.f32 %v2826_v34, %v2825_v27  ;;  %v2828_v14 = vpop.f32.mrb[10].mxu1  ;;  %v2765_v17 = vpop.f32.mrb[11].mxu0  ;;  %2894 = vmatmul.mubr.bf16.vlgmr.msra.gmra.mrb[32].mxu0 %v2003_v60 }
 0x1e7   : > { %v1843_v59 = vadd.f32 %v2763_v21, %v4724_v33  ;;  %v2766_v11 = vadd.f32 %v2765_v17, %v2764_v35  ;;  %v2829_v49 = vpop.f32.mrb[11].mxu1 }
 0x1e8   : > { %v2830_v58 = vadd.f32 %v2829_v49, %v2828_v14 }
 0x1e9   : > { %v1940_v62 = vadd.f32 %v2827_v42, %v1843_v59  ;;  %v1846_v63 = vadd.f32 %v2766_v11, %v4724_v33 }
 0x1eb   : > { %v1943_v0 = vadd.f32 %v2830_v58, %v1846_v63  ;;  %v1990_v3 = vmax.f32 %v1940_v62, 0.0 }
 0x1ed   : > { %v1991_v40 = vmax.f32 %v1943_v0, 0.0 }
 0x1ef   : > { %v2004_v36 = vpack.c.bf16 %v1991_v40, %v1990_v3 }
 0x1f1   : > { %2897 = vmatprep.mubr.bf16.mxu0 %v2004_v36 }
 0x1fa   : > { %v2767_v45 = vpop.f32.mrb[12].mxu0  ;;  %v2831_v29 = vpop.f32.mrb[12].mxu1 }
 0x1fb   : > { %v2768_v4 = vpop.f32.mrb[13].mxu0  ;;  %v2832_v61 = vpop.f32.mrb[13].mxu1 }
 0x1fc   : > { %v2769_v32 = vadd.f32 %v2768_v4, %v2767_v45  ;;  %v2770_v16 = vpop.f32.mrb[14].mxu0  ;;  %v2833_v22 = vadd.f32 %v2832_v61, %v2831_v29  ;;  %v2834_v39 = vpop.f32.mrb[14].mxu1 }
 0x1fd   : > { %v2771_v26 = vpop.f32.mrb[15].mxu0  ;;  %v2835_v20 = vpop.f32.mrb[15].mxu1 }
 0x1fe   : > { %v1851_v13 = vadd.f32 %v2769_v32, %v4724_v33  ;;  %v2772_v6 = vadd.f32 %v2771_v26, %v2770_v16  ;;  %v2836_v53 = vadd.f32 %v2835_v20, %v2834_v39 }
 0x200   : > { %v1948_v44 = vadd.f32 %v2833_v22, %v1851_v13  ;;  %v1854_v2 = vadd.f32 %v2772_v6, %v4724_v33 }
 0x202   : > { %v1951_v25 = vadd.f32 %v2836_v53, %v1854_v2  ;;  %v1992_v54 = vmax.f32 %v1948_v44, 0.0 }
 0x204   : > { %v1993_v47 = vmax.f32 %v1951_v25, 0.0 }
 0x206   : > { %v2005_v38 = vpack.c.bf16 %v1993_v47, %v1992_v54 }
 0x208   : > { %2898 = vmatmul.mubr.bf16.gmra.mrb[36].mxu0 %v2005_v38 }
 0x213   : > { %v2773_v31 = vpop.f32.mrb[16].mxu0 }
 0x214   : > { %v2774_v12 = vpop.f32.mrb[17].mxu0 }
 0x215   : > { %v2837_v57 = vpop.f32.mrb[16].mxu1  ;;  %v2775_v7 = vadd.f32 %v2774_v12, %v2773_v31  ;;  %v2776_v30 = vpop.f32.mrb[18].mxu0 }
 0x216   : > { %v2838_v52 = vpop.f32.mrb[17].mxu1  ;;  %v2777_v55 = vpop.f32.mrb[19].mxu0 }
 0x217   : > { %v2839_v24 = vadd.f32 %v2838_v52, %v2837_v57  ;;  %v2840_v37 = vpop.f32.mrb[18].mxu1  ;;  %v1859_v10 = vadd.f32 %v2775_v7, %v4724_v33  ;;  %v2778_v51 = vadd.f32 %v2777_v55, %v2776_v30 }
 0x218   : > { %v2841_v19 = vpop.f32.mrb[19].mxu1 }
 0x219   : > { %v2842_v56 = vadd.f32 %v2841_v19, %v2840_v37  ;;  %v1956_v50 = vadd.f32 %v2839_v24, %v1859_v10  ;;  %v1862_v43 = vadd.f32 %v2778_v51, %v4724_v33 }
 0x21b   : > { %v1959_v41 = vadd.f32 %v2842_v56, %v1862_v43  ;;  %v1994_v48 = vmax.f32 %v1956_v50, 0.0  ;;  %v2722_v50 = vld [vmem:[%s4875_s4] ss:$0 sm:$0xff] }
 0x21d   : > { %v1995_v9 = vmax.f32 %v1959_v41, 0.0 }
 0x21f   : > { %v2006_v1 = vpack.c.bf16 %v1995_v9, %v1994_v48 }
 0x221   : > { %2901 = vmatprep.mubr.bf16.mxu1 %v2006_v1 }
 0x228   : > { %v2779_v23 = vpop.f32.mrb[20].mxu0 }
 0x229   : > { %v2843_v28 = vpop.f32.mrb[20].mxu1  ;;  %v2780_v8 = vpop.f32.mrb[21].mxu0 }
 0x22a   : > { %v2781_v18 = vadd.f32 %v2780_v8, %v2779_v23  ;;  %v2844_v5 = vpop.f32.mrb[21].mxu1  ;;  %v2782_v15 = vpop.f32.mrb[22].mxu0 }
 0x22b   : > { %v2845_v27 = vadd.f32 %v2844_v5, %v2843_v28  ;;  %v2846_v46 = vpop.f32.mrb[22].mxu1  ;;  %v2783_v60 = vpop.f32.mrb[23].mxu0 }
 0x22c   : > { %v1867_v21 = vadd.f32 %v2781_v18, %v4724_v33  ;;  %v2784_v34 = vadd.f32 %v2783_v60, %v2782_v15  ;;  %v2847_v35 = vpop.f32.mrb[23].mxu1 }
 0x22d   : > { %v2848_v42 = vadd.f32 %v2847_v35, %v2846_v46 }
 0x22e   : > { %v1964_v14 = vadd.f32 %v2845_v27, %v1867_v21  ;;  %v1870_v17 = vadd.f32 %v2784_v34, %v4724_v33 }
 0x230   : > { %v1967_v59 = vadd.f32 %v2848_v42, %v1870_v17  ;;  %v1996_v11 = vmax.f32 %v1964_v14, 0.0 }
 0x232   : > { %v1997_v49 = vmax.f32 %v1967_v59, 0.0 }
 0x234   : > { %v2007_v58 = vpack.c.bf16 %v1997_v49, %v1996_v11 }
 0x236   : > { %2902 = vmatmul.mubr.bf16.vlgmr.msra.gmra.mrb[32].mxu1 %v2007_v58 }
 0x23b   : > { %v2785_v62 = vpop.f32.mrb[24].mxu0 }
 0x23c   : > { %v2849_v63 = vpop.f32.mrb[24].mxu1  ;;  %v2786_v0 = vpop.f32.mrb[25].mxu0 }
 0x23d   : > { %v2850_v3 = vpop.f32.mrb[25].mxu1  ;;  %v2787_v40 = vadd.f32 %v2786_v0, %v2785_v62  ;;  %v2788_v45 = vpop.f32.mrb[26].mxu0 }
 0x23e   : > { %v2851_v36 = vadd.f32 %v2850_v3, %v2849_v63  ;;  %v2852_v29 = vpop.f32.mrb[26].mxu1  ;;  %v2789_v4 = vpop.f32.mrb[27].mxu0 }
 0x23f   : > { %v2853_v32 = vpop.f32.mrb[27].mxu1  ;;  %v1875_v61 = vadd.f32 %v2787_v40, %v4724_v33  ;;  %v2790_v16 = vadd.f32 %v2789_v4, %v2788_v45 }
 0x240   : > { %v2854_v22 = vadd.f32 %v2853_v32, %v2852_v29 }
 0x241   : > { %v1972_v39 = vadd.f32 %v2851_v36, %v1875_v61  ;;  %v1878_v26 = vadd.f32 %v2790_v16, %v4724_v33 }
 0x243   : > { %v1975_v13 = vadd.f32 %v2854_v22, %v1878_v26  ;;  %v1998_v6 = vmax.f32 %v1972_v39, 0.0 }
 0x245   : > { %v1999_v20 = vmax.f32 %v1975_v13, 0.0 }
 0x247   : > { %v2008_v53 = vpack.c.bf16 %v1999_v20, %v1998_v6 }
 0x249   : > { %2905 = vmatprep.mubr.bf16.mxu1 %v2008_v53 }
 0x253   : > { %v2791_v44 = vpop.f32.mrb[28].mxu0 }
 0x254   : > { %v2855_v2 = vpop.f32.mrb[28].mxu1  ;;  %v2792_v25 = vpop.f32.mrb[29].mxu0 }
 0x255   : > { %v2856_v54 = vpop.f32.mrb[29].mxu1  ;;  %v2793_v47 = vadd.f32 %v2792_v25, %v2791_v44  ;;  %v2794_v31 = vpop.f32.mrb[30].mxu0 }
 0x256   : > { %v2857_v38 = vadd.f32 %v2856_v54, %v2855_v2  ;;  %v2858_v57 = vpop.f32.mrb[30].mxu1  ;;  %v2795_v12 = vpop.f32.mrb[31].mxu0 }
 0x257   : > { %v2859_v7 = vpop.f32.mrb[31].mxu1  ;;  %v1883_v52 = vadd.f32 %v2793_v47, %v4724_v33  ;;  %v2796_v30 = vadd.f32 %v2795_v12, %v2794_v31 }
 0x258   : > { %v2860_v24 = vadd.f32 %v2859_v7, %v2858_v57 }
 0x259   : > { %v1980_v37 = vadd.f32 %v2857_v38, %v1883_v52  ;;  %v1886_v55 = vadd.f32 %v2796_v30, %v4724_v33 }
 0x25b   : > { %v1983_v10 = vadd.f32 %v2860_v24, %v1886_v55  ;;  %v2000_v51 = vmax.f32 %v1980_v37, 0.0 }
 0x25d   : > { %v2001_v19 = vmax.f32 %v1983_v10, 0.0 }
 0x25f   : > { %v2009_v56 = vpack.c.bf16 %v2001_v19, %v2000_v51 }
 0x261   : > { %2906 = vmatmul.mubr.bf16.gmra.mrb[36].mxu1 %v2009_v56 }
 0x2b9   : > { %v2895_v43 = vpop.f32.mrb[32].mxu0 }
 0x2ba   : > { %v2124_v41 = vadd.f32 %v2895_v43, %v2722_v50  ;;  %v2115_v48 = vpop.f32.mrb[33].mxu0 }
 0x2bb   : > { %v2896_v9 = vpop.f32.mrb[34].mxu0  ;;  %v2116_v28 = vadd.f32 %v2722_v50, %v2115_v48 }
 0x2bc   : > { %2182 = vmax.xlane.f32.xlu0 %v2124_v41  ;;  %v2118_v1 = vpop.f32.mrb[35].mxu0  ;;  %v2127_v33 = vadd.f32 %v2896_v9, %v2722_v50 }
 0x2bd   : > { %v2119_v23 = vadd.f32 %v2722_v50, %v2118_v1 }
 0x2bf   : > { %2180 = vmax.xlane.f32.xlu1 %v2119_v23 }
 0x2c0   : > { %2178 = vmax.xlane.f32.xlu0 %v2116_v28 }
 0x2c4   : > { %2184 = vmax.xlane.f32.xlu0 %v2127_v33 }
 0x2db   : > { %v2899_v8 = vpop.f32.mrb[36].mxu0 }
 0x2dc   : > { %v2140_v18 = vadd.f32 %v2899_v8, %v2722_v50  ;;  %v2131_v5 = vpop.f32.mrb[37].mxu0 }
 0x2dd   : > { %v2900_v15 = vpop.f32.mrb[38].mxu0  ;;  %v2132_v60 = vadd.f32 %v2722_v50, %v2131_v5 }
 0x2de   : > { %v2143_v27 = vadd.f32 %v2900_v15, %v2722_v50  ;;  %v2134_v46 = vpop.f32.mrb[39].mxu0  ;;  %2190 = vmax.xlane.f32.xlu1 %v2140_v18 }
 0x2df   : > { %v4745_v21 = vadd.f32 %v2722_v50, %v2134_v46 }
 0x2e0   : > { %2192 = vmax.xlane.f32.xlu0 %v2143_v27 }
 0x2e2   : > { %2186 = vmax.xlane.f32.xlu1 %v2132_v60 }
 0x2e4   : > { %2188 = vmax.xlane.f32.xlu0 %v4745_v21 }
 0x309   : > { %v2903_v34 = vpop.f32.mrb[32].mxu1 }
 0x30a   : > { %v4748_v35 = vadd.f32 %v2903_v34, %v2722_v50  ;;  %v2147_v42 = vpop.f32.mrb[33].mxu1 }
 0x30b   : > { %v2904_v14 = vpop.f32.mrb[34].mxu1  ;;  %v4753_v11 = vadd.f32 %v2722_v50, %v2147_v42 }
 0x30c   : > { %v4750_v17 = vadd.f32 %v2904_v14, %v2722_v50  ;;  %v2150_v59 = vpop.f32.mrb[35].mxu1  ;;  %2198 = vmax.xlane.f32.xlu1 %v4748_v35 }
 0x30d   : > { %v4756_v49 = vadd.f32 %v2722_v50, %v2150_v59 }
 0x30e   : > { %2200 = vmax.xlane.f32.xlu0 %v4750_v17 }
 0x310   : > { %2194 = vmax.xlane.f32.xlu1 %v4753_v11 }
 0x312   : > { %2196 = vmax.xlane.f32.xlu0 %v4756_v49 }
 0x334   : > { %v2907_v58 = vpop.f32.mrb[36].mxu1 }
 0x335   : > { %v2163_v62 = vpop.f32.mrb[37].mxu1  ;;  %v4765_v36 = vadd.f32 %v2907_v58, %v2722_v50 }
 0x336   : > { %v4760_v63 = vadd.f32 %v2722_v50, %v2163_v62  ;;  %v2908_v0 = vpop.f32.mrb[38].mxu1 }
 0x337   : > { %v2166_v3 = vpop.f32.mrb[39].mxu1  ;;  %v4768_v45 = vadd.f32 %v2908_v0, %v2722_v50 }
 0x338   : > { %v4762_v40 = vadd.f32 %v2722_v50, %v2166_v3  ;;  %2202 = vmax.xlane.f32.xlu1 %v4760_v63 }
 0x33a   : > { %2204 = vmax.xlane.f32.xlu0 %v4762_v40 }
 0x33c   : > { %2206 = vmax.xlane.f32.xlu1 %v4765_v36 }
 0x33e   : > { %2208 = vmax.xlane.f32.xlu0 %v4768_v45 }
 0x349   : > { %v2183_v29 = vpop.xlane.xlu0 %2182 }
 0x34a   : > { %v4772_v4 = vsub.f32 %v2124_v41, %v2183_v29 }
 0x34c   : > { %v2230_v32 = vmul.f32 1.442695, %v4772_v4  ;;  %v2181_v22 = vpop.xlane.xlu1 %2180 }
 0x34d   : > { %v2179_v61 = vpop.xlane.xlu0 %2178  ;;  %v4778_v13 = vsub.f32 %v2119_v23, %v2181_v22 }
 0x34e   : > { %3031 = vpow2.f32 %v2230_v32  ;;  %v4775_v16 = vsub.f32 %v2116_v28, %v2179_v61 }
 0x34f   : > { %v2228_v53 = vmul.f32 1.442695, %v4778_v13 }
 0x350   : > { %v2226_v39 = vmul.f32 1.442695, %v4775_v16 }
 0x351   : > { %v2185_v26 = vpop.xlane.xlu0 %2184 }
 0x352   : > { %3033 = vpow2.f32 %v2226_v39  ;;  %v4780_v6 = vsub.f32 %v2127_v33, %v2185_v26 }
 0x354   : > { %v2232_v20 = vmul.f32 1.442695, %v4780_v6 }
 0x356   : > { %3035 = vpow2.f32 %v2232_v20 }
 0x357   : > { %3037 = vpow2.f32 %v2228_v53 }
 0x358   : > { %v3032_v44 = vpop.eup %3031 }
 0x359   : > { %2262 = vadd.xlane.f32.xlu1 %v3032_v44 }
 0x35c   : > { %v3034_v2 = vpop.eup %3033 }
 0x35d   : > { %2258 = vadd.xlane.f32.xlu1 %v3034_v2 }
 0x360   : > { %v3036_v25 = vpop.eup %3035 }
 0x361   : > { %2264 = vadd.xlane.f32.xlu0 %v3036_v25  ;;  %v3038_v54 = vpop.eup %3037 }
 0x365   : > { %2260 = vadd.xlane.f32.xlu0 %v3038_v54 }
 0x36b   : > { %v2191_v47 = vpop.xlane.xlu1 %2190 }
 0x36c   : > { %v4784_v38 = vsub.f32 %v2140_v18, %v2191_v47 }
 0x36d   : > { %v2193_v31 = vpop.xlane.xlu0 %2192 }
 0x36e   : > { %v2238_v57 = vmul.f32 1.442695, %v4784_v38  ;;  %v4787_v12 = vsub.f32 %v2143_v27, %v2193_v31 }
 0x36f   : > { %v2187_v7 = vpop.xlane.xlu1 %2186 }
 0x370   : > { %3039 = vpow2.f32 %v2238_v57  ;;  %v2240_v52 = vmul.f32 1.442695, %v4787_v12  ;;  %v4790_v30 = vsub.f32 %v2132_v60, %v2187_v7 }
 0x371   : > { %v2189_v24 = vpop.xlane.xlu0 %2188 }
 0x372   : > { %3041 = vpow2.f32 %v2240_v52  ;;  %v2234_v37 = vmul.f32 1.442695, %v4790_v30  ;;  %v4794_v55 = vsub.f32 %v4745_v21, %v2189_v24 }
 0x374   : > { %3043 = vpow2.f32 %v2234_v37  ;;  %v2236_v10 = vmul.f32 1.442695, %v4794_v55 }
 0x376   : > { %3045 = vpow2.f32 %v2236_v10 }
 0x37a   : > { %v3040_v51 = vpop.eup %3039 }
 0x37b   : > { %2270 = vadd.xlane.f32.xlu1 %v3040_v51 }
 0x37c   : > { %v3042_v19 = vpop.eup %3041 }
 0x37d   : > { %2272 = vadd.xlane.f32.xlu0 %v3042_v19 }
 0x37e   : > { %v3044_v56 = vpop.eup %3043 }
 0x37f   : > { %2266 = vadd.xlane.f32.xlu1 %v3044_v56 }
 0x380   : > { %v3046_v50 = vpop.eup %3045 }
 0x381   : > { %2268 = vadd.xlane.f32.xlu0 %v3046_v50 }
 0x399   : > { %v2199_v43 = vpop.xlane.xlu1 %2198 }
 0x39a   : > { %v4798_v41 = vsub.f32 %v4748_v35, %v2199_v43 }
 0x39b   : > { %v2201_v48 = vpop.xlane.xlu0 %2200 }
 0x39c   : > { %v2246_v9 = vmul.f32 1.442695, %v4798_v41  ;;  %v4802_v1 = vsub.f32 %v4750_v17, %v2201_v48 }
 0x39d   : > { %v2195_v23 = vpop.xlane.xlu1 %2194 }
 0x39e   : > { %3047 = vpow2.f32 %v2246_v9  ;;  %v2248_v28 = vmul.f32 1.442695, %v4802_v1  ;;  %v4806_v33 = vsub.f32 %v4753_v11, %v2195_v23 }
 0x39f   : > { %v2197_v8 = vpop.xlane.xlu0 %2196 }
 0x3a0   : > { %3049 = vpow2.f32 %v2248_v28  ;;  %v2242_v18 = vmul.f32 1.442695, %v4806_v33  ;;  %v4810_v5 = vsub.f32 %v4756_v49, %v2197_v8 }
 0x3a2   : > { %3051 = vpow2.f32 %v2242_v18  ;;  %v2244_v15 = vmul.f32 1.442695, %v4810_v5 }
 0x3a4   : > { %3053 = vpow2.f32 %v2244_v15 }
 0x3a8   : > { %v3048_v27 = vpop.eup %3047 }
 0x3a9   : > { %2278 = vadd.xlane.f32.xlu1 %v3048_v27 }
 0x3aa   : > { %v3050_v46 = vpop.eup %3049 }
 0x3ab   : > { %2280 = vadd.xlane.f32.xlu0 %v3050_v46 }
 0x3ac   : > { %v3052_v60 = vpop.eup %3051 }
 0x3ad   : > { %2274 = vadd.xlane.f32.xlu1 %v3052_v60 }
 0x3ae   : > { %v3054_v21 = vpop.eup %3053 }
 0x3af   : > { %2276 = vadd.xlane.f32.xlu0 %v3054_v21 }
 0x3c5   : > { %v2203_v34 = vpop.xlane.xlu1 %2202 }
 0x3c6   : > { %v4814_v35 = vsub.f32 %v4760_v63, %v2203_v34 }
 0x3c7   : > { %v2205_v42 = vpop.xlane.xlu0 %2204 }
 0x3c8   : > { %v2250_v14 = vmul.f32 1.442695, %v4814_v35  ;;  %v4818_v17 = vsub.f32 %v4762_v40, %v2205_v42 }
 0x3c9   : > { %v2207_v59 = vpop.xlane.xlu1 %2206 }
 0x3ca   : > { %3055 = vpow2.f32 %v2250_v14  ;;  %v2252_v11 = vmul.f32 1.442695, %v4818_v17  ;;  %v4822_v49 = vsub.f32 %v4765_v36, %v2207_v59 }
 0x3cb   : > { %v2209_v58 = vpop.xlane.xlu0 %2208 }
 0x3cc   : > { %3057 = vpow2.f32 %v2252_v11  ;;  %v2254_v62 = vmul.f32 1.442695, %v4822_v49  ;;  %v4826_v63 = vsub.f32 %v4768_v45, %v2209_v58 }
 0x3ce   : > { %3059 = vpow2.f32 %v2254_v62  ;;  %v2256_v0 = vmul.f32 1.442695, %v4826_v63 }
 0x3d0   : > { %3061 = vpow2.f32 %v2256_v0 }
 0x3d4   : > { %v3056_v3 = vpop.eup %3055 }
 0x3d5   : > { %2282 = vadd.xlane.f32.xlu1 %v3056_v3 }
 0x3d6   : > { %v3058_v40 = vpop.eup %3057 }
 0x3d7   : > { %2284 = vadd.xlane.f32.xlu0 %v3058_v40 }
 0x3d8   : > { %v3060_v29 = vpop.eup %3059 }
 0x3d9   : > { %2286 = vadd.xlane.f32.xlu1 %v3060_v29 }
 0x3da   : > { %v3062_v36 = vpop.eup %3061 }
 0x3db   : > { %2288 = vadd.xlane.f32.xlu0 %v3062_v36 }
 0x3e6   : > { %v2263_v32 = vpop.xlane.xlu1 %2262 }
 0x3e7   : > { %3063 = vlog2.f32 %v2263_v32 }
 0x3ea   : > { %v2259_v61 = vpop.xlane.xlu1 %2258 }
 0x3eb   : > { %3065 = vlog2.f32 %v2259_v61 }
 0x3ee   : > { %v2265_v22 = vpop.xlane.xlu0 %2264 }
 0x3ef   : > { %3067 = vlog2.f32 %v2265_v22 }
 0x3f1   : > { %v3064_v45 = vpop.eup %3063 }
 0x3f2   : > { %v2295_v39 = vmul.f32 0.6931472, %v3064_v45  ;;  %v2261_v26 = vpop.xlane.xlu0 %2260 }
 0x3f3   : > { %3069 = vlog2.f32 %v2261_v26 }
 0x3f4   : > { %v2324_v20 = vsub.f32 %v4772_v4, %v2295_v39 }
 0x3f5   : > { %v3066_v53 = vpop.eup %3065 }
 0x3f6   : > { %2340 = vst [vmem:[%s4834_s24 + $0x10] sm:$0xff] %v2324_v20  ;;  %v2291_v44 = vmul.f32 0.6931472, %v3066_v53 }
 0x3f8   : > { %v2322_v2 = vsub.f32 %v4775_v16, %v2291_v44 }
 0x3f9   : > { %v3068_v25 = vpop.eup %3067 }
 0x3fa   : > { %2338 = vst [vmem:[%s4834_s24] sm:$0xff] %v2322_v2  ;;  %v2297_v54 = vmul.f32 0.6931472, %v3068_v25 }
 0x3fc   : > { %v2325_v47 = vsub.f32 %v4780_v6, %v2297_v54 }
 0x3fd   : > { %v3070_v31 = vpop.eup %3069 }
 0x3fe   : > { %2341 = vst [vmem:[%s4834_s24 + $0x18] sm:$0xff] %v2325_v47  ;;  %v2293_v57 = vmul.f32 0.6931472, %v3070_v31 }
 0x400   : > { %v2323_v7 = vsub.f32 %v4778_v13, %v2293_v57 }
 0x402   : > { %2339 = vst [vmem:[%s4834_s24 + $0x8] sm:$0xff] %v2323_v7 }
 0x408   : > { %v2271_v52 = vpop.xlane.xlu1 %2270 }
 0x409   : > { %3071 = vlog2.f32 %v2271_v52 }
 0x40a   : > { %v2273_v4 = vpop.xlane.xlu0 %2272 }
 0x40b   : > { %3073 = vlog2.f32 %v2273_v4 }
 0x40c   : > { %v2267_v24 = vpop.xlane.xlu1 %2266 }
 0x40d   : > { %3075 = vlog2.f32 %v2267_v24 }
 0x40e   : > { %v2269_v16 = vpop.xlane.xlu0 %2268 }
 0x40f   : > { %3077 = vlog2.f32 %v2269_v16 }
 0x413   : > { %v3072_v37 = vpop.eup %3071 }
 0x414   : > { %v2303_v6 = vmul.f32 0.6931472, %v3072_v37 }
 0x415   : > { %v3074_v10 = vpop.eup %3073 }
 0x416   : > { %v2328_v51 = vsub.f32 %v4784_v38, %v2303_v6  ;;  %v2305_v19 = vmul.f32 0.6931472, %v3074_v10 }
 0x417   : > { %v3076_v13 = vpop.eup %3075 }
 0x418   : > { %2344 = vst [vmem:[%s4834_s24 + $0x30] sm:$0xff] %v2328_v51  ;;  %v2329_v56 = vsub.f32 %v4787_v12, %v2305_v19  ;;  %v2299_v50 = vmul.f32 0.6931472, %v3076_v13 }
 0x419   : > { %v3078_v43 = vpop.eup %3077 }
 0x41a   : > { %2345 = vst [vmem:[%s4834_s24 + $0x38] sm:$0xff] %v2329_v56  ;;  %v2326_v48 = vsub.f32 %v4790_v30, %v2299_v50  ;;  %v2301_v9 = vmul.f32 0.6931472, %v3078_v43 }
 0x41c   : > { %2342 = vst [vmem:[%s4834_s24 + $0x20] sm:$0xff] %v2326_v48  ;;  %v2327_v23 = vsub.f32 %v4794_v55, %v2301_v9 }
 0x41e   : > { %2343 = vst [vmem:[%s4834_s24 + $0x28] sm:$0xff] %v2327_v23 }
 0x436   : > { %v2279_v28 = vpop.xlane.xlu1 %2278 }
 0x437   : > { %3079 = vlog2.f32 %v2279_v28 }
 0x438   : > { %v2281_v8 = vpop.xlane.xlu0 %2280 }
 0x439   : > { %3081 = vlog2.f32 %v2281_v8 }
 0x43a   : > { %v2275_v38 = vpop.xlane.xlu1 %2274 }
 0x43b   : > { %3083 = vlog2.f32 %v2275_v38 }
 0x43c   : > { %v2277_v12 = vpop.xlane.xlu0 %2276 }
 0x43d   : > { %3085 = vlog2.f32 %v2277_v12 }
 0x441   : > { %v3080_v18 = vpop.eup %3079 }
 0x442   : > { %v2311_v15 = vmul.f32 0.6931472, %v3080_v18 }
 0x443   : > { %v3082_v30 = vpop.eup %3081 }
 0x444   : > { %v2332_v27 = vsub.f32 %v4798_v41, %v2311_v15  ;;  %v2313_v46 = vmul.f32 0.6931472, %v3082_v30 }
 0x445   : > { %v3084_v55 = vpop.eup %3083 }
 0x446   : > { %2348 = vst [vmem:[%s4834_s24 + $0x50] sm:$0xff] %v2332_v27  ;;  %v2333_v60 = vsub.f32 %v4802_v1, %v2313_v46  ;;  %v2307_v21 = vmul.f32 0.6931472, %v3084_v55 }
 0x447   : > { %v3086_v34 = vpop.eup %3085 }
 0x448   : > { %2349 = vst [vmem:[%s4834_s24 + $0x58] sm:$0xff] %v2333_v60  ;;  %v2330_v42 = vsub.f32 %v4806_v33, %v2307_v21  ;;  %v2309_v14 = vmul.f32 0.6931472, %v3086_v34 }
 0x44a   : > { %2346 = vst [vmem:[%s4834_s24 + $0x40] sm:$0xff] %v2330_v42  ;;  %v2331_v59 = vsub.f32 %v4810_v5, %v2309_v14 }
 0x44c   : > { %2347 = vst [vmem:[%s4834_s24 + $0x48] sm:$0xff] %v2331_v59 }
 0x462   : > { %v2283_v11 = vpop.xlane.xlu1 %2282 }
 0x463   : > { %3087 = vlog2.f32 %v2283_v11 }
 0x464   : > { %v2285_v58 = vpop.xlane.xlu0 %2284 }
 0x465   : > { %3089 = vlog2.f32 %v2285_v58 }
 0x466   : > { %v2287_v41 = vpop.xlane.xlu1 %2286 }
 0x467   : > { %3091 = vlog2.f32 %v2287_v41 }
 0x468   : > { %v2289_v1 = vpop.xlane.xlu0 %2288 }
 0x469   : > { %3093 = vlog2.f32 %v2289_v1 }
 0x46d   : > { %v3088_v62 = vpop.eup %3087 }
 0x46e   : > { %v2315_v0 = vmul.f32 0.6931472, %v3088_v62 }
 0x46f   : > { %v3090_v33 = vpop.eup %3089 }
 0x470   : > { %v2334_v3 = vsub.f32 %v4814_v35, %v2315_v0  ;;  %v2317_v40 = vmul.f32 0.6931472, %v3090_v33 }
 0x471   : > { %v3092_v5 = vpop.eup %3091 }
 0x472   : > { %2350 = vst [vmem:[%s4834_s24 + $0x60] sm:$0xff] %v2334_v3  ;;  %v2335_v29 = vsub.f32 %v4818_v17, %v2317_v40  ;;  %v2319_v36 = vmul.f32 0.6931472, %v3092_v5 }
 0x473   : > { %v3094_v32 = vpop.eup %3093 }
 0x474   : > { %2351 = vst [vmem:[%s4834_s24 + $0x68] sm:$0xff] %v2335_v29  ;;  %v2336_v61 = vsub.f32 %v4822_v49, %v2319_v36  ;;  %v2321_v22 = vmul.f32 0.6931472, %v3094_v32 }
 0x476   : > { %2352 = vst [vmem:[%s4834_s24 + $0x70] sm:$0xff] %v2336_v61  ;;  %v2337_v45 = vsub.f32 %v4826_v63, %v2321_v22 }
 0x478   : > { %2353 = vst [vmem:[%s4834_s24 + $0x78] sm:$0xff] %v2337_v45 }
 0x479 PF: > { %s16_s18 = sadd.s32 1, %s3133_s18  }
 0x47a   : > { %p13_p3 = scmp.ge.s32.totalorder %s16_s18, 4  }
 0x47c   :  { %15 = sbr.rel (!%p13_p3) target bundleno = 1 (0x1), region = 75 }
 0x483   :  { %2376 = vsyncpa [#allocation3], 1 }
 0x484   :  { %2378 = vsyncpa [#allocation3 + $0x1], 1 }

</bundles_post_ra>
